<compile_context>
chip_gen: v6e
topology: v6e:2x2x1
jax: 0.10.0
libtpu: 0.0.40
codegen_flags: <defaults>
</compile_context>

<pallas_src>
import functools

import jax
import jax.numpy as jnp
import numpy as np
from jax import lax
from jax.experimental import pallas as pl
from jax.experimental.pallas import tpu as pltpu


# ---------------------------------------------------------------------------
# Kernel 1: masked per-feature sum / sum-of-squares for BatchNorm1d statistics
# ---------------------------------------------------------------------------
def bn_stats_kernel(x_ref, len_ref, sum_ref, sq_ref):
    # x_ref:   (Bt_s, TT, D) f32 batch-first block
    # len_ref: (Bt_s, 1, 1) int32 per-sequence lengths for this batch tile
    # sum_ref, sq_ref: (1, 1, D) per-batch-tile partial accumulators, resident across
    #                  the (last, "arbitrary") time-block grid axis
    tb = pl.program_id(1)
    Bt, TT, _ = x_ref.shape

    @pl.when(tb == 0)
    def _init():
        sum_ref[...] = jnp.zeros_like(sum_ref)
        sq_ref[...] = jnp.zeros_like(sq_ref)

    t_idx = tb * TT + lax.broadcasted_iota(jnp.int32, (Bt, TT, 1), 1)
    mask = t_idx < len_ref[...]                    # (Bt, TT, 1): valid time steps only
    xm = jnp.where(mask, x_ref[...], 0.0)
    sum_ref[...] += jnp.sum(xm, axis=(0, 1), keepdims=True)
    sq_ref[...] += jnp.sum(xm * xm, axis=(0, 1), keepdims=True)


# ---------------------------------------------------------------------------
# Kernel 2: fused BN-folded input projection + LSTM recurrence (bias=False)
# ---------------------------------------------------------------------------
def lstm_kernel(bs_ref, x_ref, wp_ref, bp_ref, whh_ref, y_ref, gx_ref, h_ref, c_ref):
    # bs_ref : (T_pad,) int32 SMEM (scalar prefetch) -- #active sequences per timestep
    # x_ref  : (TT, Bt, D)   f32  time-major input block
    # wp_ref : (D, 4Hp)      bf16 BN-folded input weights (constant-index, resident)
    # bp_ref : (1, 4Hp)      f32  BN-folded input bias
    # whh_ref: (Hp, 4Hp)     bf16 recurrent weights (constant-index, resident)
    # y_ref  : (TT, Bt, Hp)  f32  time-major output block
    # gx_ref : (TT, Bt, 4Hp) f32  VMEM scratch -- hoisted input projection
    # h_ref, c_ref: (Bt, Hp) f32  persistent recurrent state
    bi = pl.program_id(0)
    tb = pl.program_id(1)
    TT, Bt, D = x_ref.shape
    Hp = h_ref.shape[1]
    t0 = tb * TT
    row0 = bi * Bt

    @pl.when(tb == 0)
    def _init():
        h_ref[...] = jnp.zeros_like(h_ref)
        c_ref[...] = jnp.zeros_like(c_ref)

    bs0 = bs_ref[t0]      # active sequences at block start (lengths are descending)

    @pl.when(bs0 <= row0)
    def _all_padding():   # every row of this batch tile has already ended -> zeros
        y_ref[...] = jnp.zeros_like(y_ref)

    @pl.when(bs0 > row0)
    def _compute():
        # (a) Hoisted input projection for the whole time block: one big MXU matmul.
        x2 = x_ref[...].reshape(TT * Bt, D).astype(jnp.bfloat16)
        g = jnp.dot(x2, wp_ref[...], preferred_element_type=jnp.float32) + bp_ref[...]
        gx_ref[...] = g.reshape(TT, Bt, 4 * Hp)

        whh = whh_ref[...]
        rows = row0 + lax.broadcasted_iota(jnp.int32, (Bt, 1), 0)

        def sigmoid_eup(z):                 # one EUP op instead of exp + divide
            return 0.5 * jnp.tanh(0.5 * z) + 0.5

        # (b) Recurrence: only h @ W_hh^T per step.  Leading-axis [tt] indexing keeps
        #     every gx load / y store a full (8,128)-tile access (no masked stores).
        def step(tt, carry):
            h = h_ref[...]
            c = c_ref[...]
            gates = gx_ref[tt] + jnp.dot(h.astype(jnp.bfloat16), whh,
                                         preferred_element_type=jnp.float32)
            # PyTorch nn.LSTM gate packing order: i, f, g, o  (Hp is lane-aligned)
            i_g = sigmoid_eup(gates[:, 0 * Hp:1 * Hp])
            f_g = sigmoid_eup(gates[:, 1 * Hp:2 * Hp])
            g_g = jnp.tanh(gates[:, 2 * Hp:3 * Hp])
            o_g = sigmoid_eup(gates[:, 3 * Hp:4 * Hp])
            c_new = f_g * c + i_g * g_g
            h_new = o_g * jnp.tanh(c_new)
            mask = rows < bs_ref[t0 + tt]                     # (Bt, 1) valid rows
            c_ref[...] = jnp.where(mask, c_new, c)
            h_ref[...] = jnp.where(mask, h_new, h)
            y_ref[tt] = jnp.where(mask, h_new, 0.0)           # zeros at padding
            return carry

        lax.fori_loop(0, TT, step, 0, unroll=8)


# ---------------------------------------------------------------------------
# Wrapper
# ---------------------------------------------------------------------------
def _round_up(x, m):
    return ((x + m - 1) // m) * m


def _tpu_vmem_capacity():
    try:
        cap = getattr(pltpu.get_tpu_info(), "vmem_capacity_bytes", None)
        if cap:
            return int(cap)
    except Exception:
        pass
    return 64 * 1024 * 1024        # conservative default (v7x per-core VMEM)


def _tensorcores_per_chip():
    try:
        info = pltpu.get_tpu_info()
        for name in ("num_cores", "tensorcores_per_chip", "num_tensorcores", "core_count"):
            n = getattr(info, name, None)
            if n in (1, 2):        # only trust values that look like TCs-per-chip
                return int(n)
    except Exception:
        pass
    return 1


def _batch_tiles(b_pad):
    # divisors of b_pad that are multiples of 8, descending (b_pad itself qualifies)
    return [d for d in range(b_pad, 7, -1) if b_pad % d == 0 and d % 8 == 0]


@functools.partial(jax.jit, static_argnames=("eps",))
def batch_rnn_forward(x, lengths, w_ih, w_hh, gamma, beta, eps=1e-5):
    """x: (B, T, D) padded batch-first; lengths: (B,) int32 DESCENDING (packed-sequence
    invariant).  Returns padded LSTM output (B, T, H), zeros for t >= lengths[b]."""
    B, T, D = x.shape
    H = w_hh.shape[1]
    G = 4 * H
    assert w_hh.shape == (G, H) and w_ih.shape == (G, D)   # nn.LSTM (i,f,g,o) packing

    x = x.astype(jnp.float32)
    lengths = lengths.astype(jnp.int32)

    # ---- static tiling / padding decisions (trace time) -------------------------
    B_pad = _round_up(B, 8)
    Hp = _round_up(H, 128)                  # lane-aligned gate blocks / y stores
    Gp = 4 * Hp

    vmem_cap = _tpu_vmem_capacity()
    vmem_budget = int(vmem_cap * 0.55)
    vmem_limit = int(vmem_cap * 0.85)

    def lstm_vmem_bytes(bt, tt):
        blocks = tt * bt * (2 * D * 4       # x block (double-buffered, f32)
                            + Gp * 4        # gx VMEM scratch
                            + 2 * Hp * 4)   # y block (double-buffered, f32)
        state = 2 * bt * Hp * 4             # h, c scratch
        weights = 2 * (D * Gp * 2 + Hp * Gp * 2 + Gp * 4)   # resident, double-buffered
        return blocks + state + weights

    tiles = _batch_tiles(B_pad)
    Bt = B_pad                              # whole batch per grid step on 1-TC chips
    if _tensorcores_per_chip() >= 2 and (B_pad // 2) % 8 == 0:
        Bt = B_pad // 2                     # one batch tile per TensorCore (megacore)
    for cand in tiles:                      # shrink only if even TT=8 would overflow
        if cand > Bt:
            continue
        Bt = cand
        if lstm_vmem_bytes(Bt, 8) <= vmem_budget:
            break
    nb_b = B_pad // Bt

    TT = 8                                  # biggest time block that fits the budget
    for cand in range(128, 7, -8):
        if lstm_vmem_bytes(Bt, cand) <= vmem_budget:
            TT = cand
            break
    TT = min(TT, _round_up(T, 8))
    T_pad = _round_up(T, TT)
    nb_t = T_pad // TT

    Bt_s = B_pad                            # stats batch tile: bound (Bt_s,TT,D) block
    for cand in tiles:
        Bt_s = cand
        if 2 * cand * TT * D * 4 <= vmem_budget:
            break
    nb_bs = B_pad // Bt_s

    # ---- padding (batch to B_pad, time to T_pad; padded rows have length 0) -----
    x_p = jnp.pad(x, ((0, B_pad - B), (0, T_pad - T), (0, 0)))
    len_p = jnp.pad(lengths, (0, B_pad - B))

    # ---- Pass 1: BN statistics over valid time steps only -----------------------
    psum, psq = pl.pallas_call(
        bn_stats_kernel,
        out_shape=(jax.ShapeDtypeStruct((nb_bs, 1, D), jnp.float32),
                   jax.ShapeDtypeStruct((nb_bs, 1, D), jnp.float32)),
        grid_spec=pltpu.PrefetchScalarGridSpec(
            num_scalar_prefetch=0,
            grid=(nb_bs, nb_t),
            in_specs=[
                pl.BlockSpec((Bt_s, TT, D), lambda bi, tb: (bi, tb, 0)),
                pl.BlockSpec((Bt_s, 1, 1), lambda bi, tb: (bi, 0, 0)),
            ],
            out_specs=[
                pl.BlockSpec((1, 1, D), lambda bi, tb: (bi, 0, 0)),
                pl.BlockSpec((1, 1, D), lambda bi, tb: (bi, 0, 0)),
            ],
        ),
        compiler_params=pltpu.CompilerParams(
            dimension_semantics=("parallel", "arbitrary"),
            vmem_limit_bytes=vmem_limit),
    )(x_p, len_p.reshape(B_pad, 1, 1))

    count = jnp.maximum(jnp.sum(lengths).astype(jnp.float32), 1.0)  # empty-batch guard
    mean = jnp.sum(psum, axis=(0, 1)) / count                       # (D,)
    # NOTE: one-pass E[x^2]-E[x]^2 biased variance (clamped) -- hazard for huge means.
    var = jnp.maximum(jnp.sum(psq, axis=(0, 1)) / count - mean * mean, 0.0)
    invstd = lax.rsqrt(var + eps)
    scale = gamma.astype(jnp.float32) * invstd                      # (D,)
    shift = beta.astype(jnp.float32) - mean * scale                 # (D,)

    # ---- Fold BN affine into the (H-padded) input projection --------------------
    w_ih_f = w_ih.astype(jnp.float32).reshape(4, H, D)
    w_hh_f = w_hh.astype(jnp.float32).reshape(4, H, H)
    if Hp != H:
        w_ih_f = jnp.pad(w_ih_f, ((0, 0), (0, Hp - H), (0, 0)))
        w_hh_f = jnp.pad(w_hh_f, ((0, 0), (0, Hp - H), (0, Hp - H)))
    w_ih_f = w_ih_f.reshape(Gp, D)
    w_hh_f = w_hh_f.reshape(Gp, Hp)
    w_proj = (scale[:, None] * w_ih_f.T).astype(jnp.bfloat16)       # (D, 4Hp)
    b_proj = (shift @ w_ih_f.T).reshape(1, Gp)                      # (1, 4Hp) f32
    w_hh_t = w_hh_f.T.astype(jnp.bfloat16)                          # (Hp, 4Hp)

    # ---- time-major input + per-timestep active batch size (packed batch_sizes) -
    x_tm = jnp.transpose(x_p, (1, 0, 2))                            # (T_pad, B_pad, D)
    bs = jnp.sum((jnp.arange(T_pad, dtype=jnp.int32)[:, None]
                  < lengths[None, :]).astype(jnp.int32), axis=1)    # (T_pad,)

    # ---- Pass 2: fused BN-folded projection + sequential LSTM recurrence --------
    y_tm = pl.pallas_call(
        lstm_kernel,
        out_shape=jax.ShapeDtypeStruct((T_pad, B_pad, Hp), jnp.float32),
        grid_spec=pltpu.PrefetchScalarGridSpec(
            num_scalar_prefetch=1,                                  # bs -> SMEM
            grid=(nb_b, nb_t),
            in_specs=[
                pl.BlockSpec((TT, Bt, D), lambda bi, tb, bs_ref: (tb, bi, 0)),
                pl.BlockSpec((D, Gp), lambda bi, tb, bs_ref: (0, 0)),
                pl.BlockSpec((1, Gp), lambda bi, tb, bs_ref: (0, 0)),
                pl.BlockSpec((Hp, Gp), lambda bi, tb, bs_ref: (0, 0)),
            ],
            out_specs=pl.BlockSpec((TT, Bt, Hp), lambda bi, tb, bs_ref: (tb, bi, 0)),
            scratch_shapes=[
                pltpu.VMEM((TT, Bt, Gp), jnp.float32),   # hoisted input projection
                pltpu.VMEM((Bt, Hp), jnp.float32),       # h state
                pltpu.VMEM((Bt, Hp), jnp.float32),       # c state
            ],
        ),
        compiler_params=pltpu.CompilerParams(
            dimension_semantics=("parallel", "arbitrary"),
            vmem_limit_bytes=vmem_limit),
    )(bs, x_tm, w_proj, b_proj, w_hh_t)

    # Back to batch-first and strip batch/time/hidden padding (off the critical path).
    return jnp.transpose(y_tm, (1, 0, 2))[:B, :T, :H]


# ---------------------------------------------------------------------------
# Pure-JAX reference (mirrors the PyTorch forward) for a sanity check
# ---------------------------------------------------------------------------
def reference_forward(x, lengths, w_ih, w_hh, gamma, beta, eps=1e-5):
    B, T, D = x.shape
    H = w_hh.shape[1]
    x = x.astype(jnp.float32)
    mask = jnp.arange(T)[None, :] < lengths[:, None]           # (B, T)
    m = mask[..., None].astype(jnp.float32)
    count = jnp.sum(lengths).astype(jnp.float32)
    mean = jnp.sum(x * m, axis=(0, 1)) / count
    var = jnp.sum(((x - mean) ** 2) * m, axis=(0, 1)) / count
    xn = (x - mean) / jnp.sqrt(var + eps) * gamma + beta

    h = jnp.zeros((B, H), jnp.float32)
    c = jnp.zeros((B, H), jnp.float32)
    ys = []
    for t in range(T):
        gates = xn[:, t, :] @ w_ih.T + h @ w_hh.T
        i_g = jax.nn.sigmoid(gates[:, 0 * H:1 * H])
        f_g = jax.nn.sigmoid(gates[:, 1 * H:2 * H])
        g_g = jnp.tanh(gates[:, 2 * H:3 * H])
        o_g = jax.nn.sigmoid(gates[:, 3 * H:4 * H])
        c_new = f_g * c + i_g * g_g
        h_new = o_g * jnp.tanh(c_new)
        mt = mask[:, t:t + 1]
        c = jnp.where(mt, c_new, c)
        h = jnp.where(mt, h_new, h)
        ys.append(jnp.where(mt, h_new, 0.0))
    return jnp.stack(ys, axis=1)


if __name__ == "__main__":
    B, T, D, H = 4, 8, 16, 32   # batch, seq_len, input_size, hidden_size

    key = jax.random.PRNGKey(0)
    kx, k1, k2, k3, k4 = jax.random.split(key, 5)

    # Padded batch-first input + descending lengths (pack_padded_sequence style).
    x = jax.random.normal(kx, (B, T, D), jnp.float32)
    lengths = jnp.array([8, 6, 5, 3], jnp.int32)
    assert bool(jnp.all(lengths[:-1] >= lengths[1:])), "lengths must be descending"

    # Deterministic parameter init (shapes per nn.LSTM / nn.BatchNorm1d __init__).
    k = 1.0 / np.sqrt(H)
    w_ih = jax.random.uniform(k1, (4 * H, D), jnp.float32, -k, k)   # weight_ih_l0
    w_hh = jax.random.uniform(k2, (4 * H, H), jnp.float32, -k, k)   # weight_hh_l0
    gamma = 1.0 + 0.1 * jax.random.normal(k3, (D,), jnp.float32)    # BN weight
    beta = 0.1 * jax.random.normal(k4, (D,), jnp.float32)           # BN bias

    y = batch_rnn_forward(x, lengths, w_ih, w_hh, gamma, beta)
    y = jax.block_until_ready(y)

    y_ref = reference_forward(x, lengths, w_ih, w_hh, gamma, beta)
    # Kernel uses bf16 MXU operands (f32 accumulation) vs. the pure-f32 reference.
    np.testing.assert_allclose(np.asarray(y), np.asarray(y_ref), rtol=2e-2, atol=2e-2)

    # TODO(synk): the PackedSequence container itself (Var_to_packed /
    # pack_padded_sequence) has no Pallas equivalent; it is represented as a padded
    # batch-first tensor + descending per-sequence lengths with in-kernel masking.
    print("KERNEL_OK")
</pallas_src>

<mosaic_0001>
module attributes {stable_mosaic.version = 11 : i64} {
  func.func @bn_stats_kernel(%arg0: i32, %arg1: i32, %arg2: memref<8x8x16xf32, #tpu.memory_space<vmem>>, %arg3: memref<8x1x1xi32, #tpu.memory_space<vmem>>, %arg4: memref<1x1x16xf32, #tpu.memory_space<vmem>>, %arg5: memref<1x1x16xf32, #tpu.memory_space<vmem>>) attributes {dimension_semantics = [#tpu.dimension_semantics<parallel>, #tpu.dimension_semantics<arbitrary>], iteration_bounds = array<i64: 1, 1>, scalar_prefetch = 0 : i64, scratch_operands = 0 : i64, tpu.core_type = #tpu.core_type<tc>, window_params = [{transform_indices = @transform_0, window_bounds = array<i64: 8, 8, 16>}, {transform_indices = @transform_1, window_bounds = array<i64: 8, 1, 1>}, {transform_indices = @transform_2, window_bounds = array<i64: 1, 1, 16>}, {transform_indices = @transform_3, window_bounds = array<i64: 1, 1, 16>}]} {
    %c0_i32 = arith.constant 0 : i32
    %0 = arith.cmpi eq, %arg1, %c0_i32 : i32
    %1 = arith.extui %0 : i1 to i32
    %c0_i32_0 = arith.constant 0 : i32
    %2 = arith.cmpi ne, %1, %c0_i32_0 : i32
    scf.if %2 {
      %cst_20 = arith.constant 0.000000e+00 : f32
      %26 = vector.broadcast %cst_20 : f32 to vector<1x1x16xf32>
      %c0_21 = arith.constant 0 : index
      %c0_22 = arith.constant 0 : index
      %c0_23 = arith.constant 0 : index
      %27 = vector.load %arg4[%c0_21, %c0_22, %c0_23] : memref<1x1x16xf32, #tpu.memory_space<vmem>>, vector<1x1x16xf32>
      tpu.vector_store %arg4[%c0_21, %c0_22, %c0_23], %26 {strides = array<i32>} : memref<1x1x16xf32, #tpu.memory_space<vmem>>, vector<1x1x16xf32>,
      %cst_24 = arith.constant 0.000000e+00 : f32
      %28 = vector.broadcast %cst_24 : f32 to vector<1x1x16xf32>
      %c0_25 = arith.constant 0 : index
      %c0_26 = arith.constant 0 : index
      %c0_27 = arith.constant 0 : index
      %29 = vector.load %arg5[%c0_25, %c0_26, %c0_27] : memref<1x1x16xf32, #tpu.memory_space<vmem>>, vector<1x1x16xf32>
      tpu.vector_store %arg5[%c0_25, %c0_26, %c0_27], %28 {strides = array<i32>} : memref<1x1x16xf32, #tpu.memory_space<vmem>>, vector<1x1x16xf32>,
    } else {
    }
    %c8_i32 = arith.constant 8 : i32
    %3 = arith.muli %arg1, %c8_i32 : i32
    %4 = tpu.iota {dimensions = array<i32: 1>} : vector<8x8x1xi32>
    %5 = vector.broadcast %3 : i32 to vector<8x8x1xi32>
    %6 = arith.addi %5, %4 : vector<8x8x1xi32>
    %c0 = arith.constant 0 : index
    %c0_1 = arith.constant 0 : index
    %c0_2 = arith.constant 0 : index
    %7 = vector.load %arg3[%c0, %c0_1, %c0_2] : memref<8x1x1xi32, #tpu.memory_space<vmem>>, vector<8x1x1xi32>
    %8 = vector.broadcast %7 : vector<8x1x1xi32> to vector<8x8x1xi32>
    %9 = arith.cmpi slt, %6, %8 : vector<8x8x1xi32>
    %c0_3 = arith.constant 0 : index
    %c0_4 = arith.constant 0 : index
    %c0_5 = arith.constant 0 : index
    %10 = vector.load %arg2[%c0_3, %c0_4, %c0_5] : memref<8x8x16xf32, #tpu.memory_space<vmem>>, vector<8x8x16xf32>
    %cst = arith.constant 0.000000e+00 : f32
    %11 = vector.shape_cast %9 : vector<8x8x1xi1> to vector<8x8x1xi1>
    %12 = vector.broadcast %11 : vector<8x8x1xi1> to vector<8x8x16xi1>
    %13 = vector.broadcast %cst : f32 to vector<8x8x16xf32>
    %14 = arith.select %12, %10, %13 : vector<8x8x16xi1>, vector<8x8x16xf32>
    %c0_6 = arith.constant 0 : index
    %c0_7 = arith.constant 0 : index
    %c0_8 = arith.constant 0 : index
    %15 = vector.load %arg4[%c0_6, %c0_7, %c0_8] : memref<1x1x16xf32, #tpu.memory_space<vmem>>, vector<1x1x16xf32>
    %cst_9 = arith.constant dense<0.000000e+00> : vector<16xf32>
    %16 = vector.multi_reduction <add>, %14, %cst_9 [0, 1] : vector<8x8x16xf32> to vector<16xf32>
    %17 = vector.shape_cast %16 : vector<16xf32> to vector<1x1x16xf32>
    %18 = arith.addf %15, %17 : vector<1x1x16xf32>
    %c0_10 = arith.constant 0 : index
    %c0_11 = arith.constant 0 : index
    %c0_12 = arith.constant 0 : index
    %19 = vector.load %arg4[%c0_10, %c0_11, %c0_12] : memref<1x1x16xf32, #tpu.memory_space<vmem>>, vector<1x1x16xf32>
    tpu.vector_store %arg4[%c0_10, %c0_11, %c0_12], %18 {strides = array<i32>} : memref<1x1x16xf32, #tpu.memory_space<vmem>>, vector<1x1x16xf32>,
    %c0_13 = arith.constant 0 : index
    %c0_14 = arith.constant 0 : index
    %c0_15 = arith.constant 0 : index
    %20 = vector.load %arg5[%c0_13, %c0_14, %c0_15] : memref<1x1x16xf32, #tpu.memory_space<vmem>>, vector<1x1x16xf32>
    %21 = arith.mulf %14, %14 : vector<8x8x16xf32>
    %cst_16 = arith.constant dense<0.000000e+00> : vector<16xf32>
    %22 = vector.multi_reduction <add>, %21, %cst_16 [0, 1] : vector<8x8x16xf32> to vector<16xf32>
    %23 = vector.shape_cast %22 : vector<16xf32> to vector<1x1x16xf32>
    %24 = arith.addf %20, %23 : vector<1x1x16xf32>
    %c0_17 = arith.constant 0 : index
    %c0_18 = arith.constant 0 : index
    %c0_19 = arith.constant 0 : index
    %25 = vector.load %arg5[%c0_17, %c0_18, %c0_19] : memref<1x1x16xf32, #tpu.memory_space<vmem>>, vector<1x1x16xf32>
    tpu.vector_store %arg5[%c0_17, %c0_18, %c0_19], %24 {strides = array<i32>} : memref<1x1x16xf32, #tpu.memory_space<vmem>>, vector<1x1x16xf32>,
    return
  }
  func.func @transform_0(%arg0: i32, %arg1: i32) -> (i32, i32, i32) {
    %c0_i32 = arith.constant 0 : i32
    %c0_i32_0 = arith.constant 0 : i32
    return %arg0, %arg1, %c0_i32 : i32, i32, i32
  }
  func.func @transform_1(%arg0: i32, %arg1: i32) -> (i32, i32, i32) {
    %c0_i32 = arith.constant 0 : i32
    %c0_i32_0 = arith.constant 0 : i32
    %c0_i32_1 = arith.constant 0 : i32
    return %arg0, %c0_i32, %c0_i32_0 : i32, i32, i32
  }
  func.func @transform_2(%arg0: i32, %arg1: i32) -> (i32, i32, i32) {
    %c0_i32 = arith.constant 0 : i32
    %c0_i32_0 = arith.constant 0 : i32
    %c0_i32_1 = arith.constant 0 : i32
    return %arg0, %c0_i32, %c0_i32_0 : i32, i32, i32
  }
  func.func @transform_3(%arg0: i32, %arg1: i32) -> (i32, i32, i32) {
    %c0_i32 = arith.constant 0 : i32
    %c0_i32_0 = arith.constant 0 : i32
    %c0_i32_1 = arith.constant 0 : i32
    return %arg0, %c0_i32, %c0_i32_0 : i32, i32, i32
  }
}

module attributes {stable_mosaic.version = 11 : i64} {
  func.func @lstm_kernel(%arg0: i32, %arg1: i32, %arg2: memref<8xi32, #tpu.memory_space<smem>>, %arg3: memref<8x8x16xf32, #tpu.memory_space<vmem>>, %arg4: memref<16x512xbf16, #tpu.memory_space<vmem>>, %arg5: memref<1x512xf32, #tpu.memory_space<vmem>>, %arg6: memref<128x512xbf16, #tpu.memory_space<vmem>>, %arg7: memref<8x8x128xf32, #tpu.memory_space<vmem>>, %arg8: memref<8x8x512xf32, #tpu.memory_space<vmem>>, %arg9: memref<8x128xf32, #tpu.memory_space<vmem>>, %arg10: memref<8x128xf32, #tpu.memory_space<vmem>>) attributes {dimension_semantics = [#tpu.dimension_semantics<parallel>, #tpu.dimension_semantics<arbitrary>], iteration_bounds = array<i64: 1, 1>, scalar_prefetch = 1 : i64, scratch_operands = 3 : i64, tpu.core_type = #tpu.core_type<tc>, window_params = [{transform_indices = @transform_0, window_bounds = array<i64: 8, 8, 16>}, {pipeline_mode = #tpu.pipeline_mode<synchronous>, transform_indices = @transform_1, window_bounds = array<i64: 16, 512>}, {pipeline_mode = #tpu.pipeline_mode<synchronous>, transform_indices = @transform_2, window_bounds = array<i64: 1, 512>}, {pipeline_mode = #tpu.pipeline_mode<synchronous>, transform_indices = @transform_3, window_bounds = array<i64: 128, 512>}, {transform_indices = @transform_4, window_bounds = array<i64: 8, 8, 128>}]} {
    %c8_i32 = arith.constant 8 : i32
    %0 = arith.muli %arg1, %c8_i32 : i32
    %c8_i32_0 = arith.constant 8 : i32
    %1 = arith.muli %arg0, %c8_i32_0 : i32
    %c0_i32 = arith.constant 0 : i32
    %2 = arith.cmpi eq, %arg1, %c0_i32 : i32
    %3 = arith.extui %2 : i1 to i32
    %c0_i32_1 = arith.constant 0 : i32
    %4 = arith.cmpi ne, %3, %c0_i32_1 : i32
    scf.if %4 {
      %cst = arith.constant 0.000000e+00 : f32
      %13 = vector.broadcast %cst : f32 to vector<8x128xf32>
      %c0 = arith.constant 0 : index
      %c0_4 = arith.constant 0 : index
      %14 = vector.load %arg9[%c0, %c0_4] : memref<8x128xf32, #tpu.memory_space<vmem>>, vector<8x128xf32>
      tpu.vector_store %arg9[%c0, %c0_4], %13 {strides = array<i32>} : memref<8x128xf32, #tpu.memory_space<vmem>>, vector<8x128xf32>,
      %cst_5 = arith.constant 0.000000e+00 : f32
      %15 = vector.broadcast %cst_5 : f32 to vector<8x128xf32>
      %c0_6 = arith.constant 0 : index
      %c0_7 = arith.constant 0 : index
      %16 = vector.load %arg10[%c0_6, %c0_7] : memref<8x128xf32, #tpu.memory_space<vmem>>, vector<8x128xf32>
      tpu.vector_store %arg10[%c0_6, %c0_7], %15 {strides = array<i32>} : memref<8x128xf32, #tpu.memory_space<vmem>>, vector<8x128xf32>,
    } else {
    }
    %5 = arith.index_cast %0 : i32 to index
    %6 = memref.load %arg2[%5] : memref<8xi32, #tpu.memory_space<smem>>
    %7 = arith.cmpi sle, %6, %1 : i32
    %8 = arith.extui %7 : i1 to i32
    %c0_i32_2 = arith.constant 0 : i32
    %9 = arith.cmpi ne, %8, %c0_i32_2 : i32
    scf.if %9 {
      %cst = arith.constant 0.000000e+00 : f32
      %13 = vector.broadcast %cst : f32 to vector<8x8x128xf32>
      %c0 = arith.constant 0 : index
      %c0_4 = arith.constant 0 : index
      %c0_5 = arith.constant 0 : index
      %14 = vector.load %arg7[%c0, %c0_4, %c0_5] : memref<8x8x128xf32, #tpu.memory_space<vmem>>, vector<8x8x128xf32>
      tpu.vector_store %arg7[%c0, %c0_4, %c0_5], %13 {strides = array<i32>} : memref<8x8x128xf32, #tpu.memory_space<vmem>>, vector<8x8x128xf32>,
    } else {
    }
    %10 = arith.cmpi sgt, %6, %1 : i32
    %11 = arith.extui %10 : i1 to i32
    %c0_i32_3 = arith.constant 0 : i32
    %12 = arith.cmpi ne, %11, %c0_i32_3 : i32
    scf.if %12 {
      %c0 = arith.constant 0 : index
      %c0_4 = arith.constant 0 : index
      %c0_5 = arith.constant 0 : index
      %13 = vector.load %arg3[%c0, %c0_4, %c0_5] : memref<8x8x16xf32, #tpu.memory_space<vmem>>, vector<8x8x16xf32>
      %14 = vector.shape_cast %13 : vector<8x8x16xf32> to vector<64x16xf32>
      %15 = arith.truncf %14 : vector<64x16xf32> to vector<64x16xbf16>
      %c0_6 = arith.constant 0 : index
      %c0_7 = arith.constant 0 : index
      %16 = vector.load %arg4[%c0_6, %c0_7] : memref<16x512xbf16, #tpu.memory_space<vmem>>, vector<16x512xbf16>
      %cst = arith.constant dense<0.000000e+00> : vector<64x512xf32>
      %17 = tpu.matmul %15, %16, %cst {dimension_numbers = #tpu.dot_dimension_numbers<[1], [0], [0], [1], [0, 0, 1, 1], [], []>} : vector<64x16xbf16>, vector<16x512xbf16>, vector<64x512xf32> -> vector<64x512xf32>
      %c0_8 = arith.constant 0 : index
      %c0_9 = arith.constant 0 : index
      %18 = vector.load %arg5[%c0_8, %c0_9] : memref<1x512xf32, #tpu.memory_space<vmem>>, vector<1x512xf32>
      %19 = vector.broadcast %18 : vector<1x512xf32> to vector<64x512xf32>
      %20 = arith.addf %17, %19 : vector<64x512xf32>
      %21 = vector.shape_cast %20 : vector<64x512xf32> to vector<8x8x512xf32>
      %c0_10 = arith.constant 0 : index
      %c0_11 = arith.constant 0 : index
      %c0_12 = arith.constant 0 : index
      %22 = vector.load %arg8[%c0_10, %c0_11, %c0_12] : memref<8x8x512xf32, #tpu.memory_space<vmem>>, vector<8x8x512xf32>
      tpu.vector_store %arg8[%c0_10, %c0_11, %c0_12], %21 {strides = array<i32>} : memref<8x8x512xf32, #tpu.memory_space<vmem>>, vector<8x8x512xf32>,
      %c0_13 = arith.constant 0 : index
      %c0_14 = arith.constant 0 : index
      %23 = vector.load %arg6[%c0_13, %c0_14] : memref<128x512xbf16, #tpu.memory_space<vmem>>, vector<128x512xbf16>
      %24 = tpu.iota {dimensions = array<i32: 0>} : vector<8x1xi32>
      %25 = vector.broadcast %1 : i32 to vector<8x1xi32>
      %26 = arith.addi %25, %24 : vector<8x1xi32>
      %c0_i32_15 = arith.constant 0 : i32
      %c0_16 = arith.constant 0 : index
      %c0_17 = arith.constant 0 : index
      %27 = vector.load %arg9[%c0_16, %c0_17] : memref<8x128xf32, #tpu.memory_space<vmem>>, vector<8x128xf32>
      %c0_18 = arith.constant 0 : index
      %c0_19 = arith.constant 0 : index
      %28 = vector.load %arg10[%c0_18, %c0_19] : memref<8x128xf32, #tpu.memory_space<vmem>>, vector<8x128xf32>
      %29 = arith.index_cast %c0_i32_15 : i32 to index
      %c0_20 = arith.constant 0 : index
      %c0_21 = arith.constant 0 : index
      %30 = vector.load %arg8[%29, %c0_20, %c0_21] : memref<8x8x512xf32, #tpu.memory_space<vmem>>, vector<1x8x512xf32>
      %31 = vector.shape_cast %30 : vector<1x8x512xf32> to vector<8x512xf32>
      %32 = arith.truncf %27 : vector<8x128xf32> to vector<8x128xbf16>
      %cst_22 = arith.constant dense<0.000000e+00> : vector<8x512xf32>
      %33 = tpu.matmul %32, %23, %cst_22 {dimension_numbers = #tpu.dot_dimension_numbers<[1], [0], [0], [1], [0, 0, 1, 1], [], []>} : vector<8x128xbf16>, vector<128x512xbf16>, vector<8x512xf32> -> vector<8x512xf32>
      %34 = arith.addf %31, %33 : vector<8x512xf32>
      %35 = vector.extract_strided_slice %34 {offsets = [0, 0], sizes = [8, 128], strides = [1, 1]} : vector<8x512xf32> to vector<8x128xf32>
      %cst_23 = arith.constant 5.000000e-01 : f32
      %36 = vector.broadcast %cst_23 : f32 to vector<8x128xf32>
      %37 = arith.mulf %36, %35 : vector<8x128xf32>
      %38 = math.tanh %37 : vector<8x128xf32>
      %cst_24 = arith.constant 5.000000e-01 : f32
      %39 = vector.broadcast %cst_24 : f32 to vector<8x128xf32>
      %40 = arith.mulf %39, %38 : vector<8x128xf32>
      %cst_25 = arith.constant 5.000000e-01 : f32
      %41 = vector.broadcast %cst_25 : f32 to vector<8x128xf32>
      %42 = arith.addf %40, %41 : vector<8x128xf32>
      %43 = vector.extract_strided_slice %34 {offsets = [0, 128], sizes = [8, 128], strides = [1, 1]} : vector<8x512xf32> to vector<8x128xf32>
      %cst_26 = arith.constant 5.000000e-01 : f32
      %44 = vector.broadcast %cst_26 : f32 to vector<8x128xf32>
      %45 = arith.mulf %44, %43 : vector<8x128xf32>
      %46 = math.tanh %45 : vector<8x128xf32>
      %cst_27 = arith.constant 5.000000e-01 : f32
      %47 = vector.broadcast %cst_27 : f32 to vector<8x128xf32>
      %48 = arith.mulf %47, %46 : vector<8x128xf32>
      %cst_28 = arith.constant 5.000000e-01 : f32
      %49 = vector.broadcast %cst_28 : f32 to vector<8x128xf32>
      %50 = arith.addf %48, %49 : vector<8x128xf32>
      %51 = vector.extract_strided_slice %34 {offsets = [0, 256], sizes = [8, 128], strides = [1, 1]} : vector<8x512xf32> to vector<8x128xf32>
      %52 = math.tanh %51 : vector<8x128xf32>
      %53 = vector.extract_strided_slice %34 {offsets = [0, 384], sizes = [8, 128], strides = [1, 1]} : vector<8x512xf32> to vector<8x128xf32>
      %cst_29 = arith.constant 5.000000e-01 : f32
      %54 = vector.broadcast %cst_29 : f32 to vector<8x128xf32>
      %55 = arith.mulf %54, %53 : vector<8x128xf32>
      %56 = math.tanh %55 : vector<8x128xf32>
      %cst_30 = arith.constant 5.000000e-01 : f32
      %57 = vector.broadcast %cst_30 : f32 to vector<8x128xf32>
      %58 = arith.mulf %57, %56 : vector<8x128xf32>
      %cst_31 = arith.constant 5.000000e-01 : f32
      %59 = vector.broadcast %cst_31 : f32 to vector<8x128xf32>
      %60 = arith.addf %58, %59 : vector<8x128xf32>
      %61 = arith.mulf %50, %28 : vector<8x128xf32>
      %62 = arith.mulf %42, %52 : vector<8x128xf32>
      %63 = arith.addf %61, %62 : vector<8x128xf32>
      %64 = math.tanh %63 : vector<8x128xf32>
      %65 = arith.mulf %60, %64 : vector<8x128xf32>
      %66 = arith.addi %0, %c0_i32_15 : i32
      %67 = arith.index_cast %66 : i32 to index
      %68 = memref.load %arg2[%67] : memref<8xi32, #tpu.memory_space<smem>>
      %69 = vector.broadcast %68 : i32 to vector<8x1xi32>
      %70 = arith.cmpi slt, %26, %69 : vector<8x1xi32>
      %71 = vector.shape_cast %70 : vector<8x1xi1> to vector<8x1xi1>
      %72 = vector.broadcast %71 : vector<8x1xi1> to vector<8x128xi1>
      %73 = arith.select %72, %63, %28 : vector<8x128xi1>, vector<8x128xf32>
      %c0_32 = arith.constant 0 : index
      %c0_33 = arith.constant 0 : index
      %74 = vector.load %arg10[%c0_32, %c0_33] : memref<8x128xf32, #tpu.memory_space<vmem>>, vector<8x128xf32>
      tpu.vector_store %arg10[%c0_32, %c0_33], %73 {strides = array<i32>} : memref<8x128xf32, #tpu.memory_space<vmem>>, vector<8x128xf32>,
      %75 = vector.shape_cast %70 : vector<8x1xi1> to vector<8x1xi1>
      %76 = vector.broadcast %75 : vector<8x1xi1> to vector<8x128xi1>
      %77 = arith.select %76, %65, %27 : vector<8x128xi1>, vector<8x128xf32>
      %c0_34 = arith.constant 0 : index
      %c0_35 = arith.constant 0 : index
      %78 = vector.load %arg9[%c0_34, %c0_35] : memref<8x128xf32, #tpu.memory_space<vmem>>, vector<8x128xf32>
      tpu.vector_store %arg9[%c0_34, %c0_35], %77 {strides = array<i32>} : memref<8x128xf32, #tpu.memory_space<vmem>>, vector<8x128xf32>,
      %cst_36 = arith.constant 0.000000e+00 : f32
      %79 = vector.shape_cast %70 : vector<8x1xi1> to vector<8x1xi1>
      %80 = vector.broadcast %79 : vector<8x1xi1> to vector<8x128xi1>
      %81 = vector.broadcast %cst_36 : f32 to vector<8x128xf32>
      %82 = arith.select %80, %65, %81 : vector<8x128xi1>, vector<8x128xf32>
      %83 = arith.index_cast %c0_i32_15 : i32 to index
      %c0_37 = arith.constant 0 : index
      %c0_38 = arith.constant 0 : index
      %84 = vector.load %arg7[%83, %c0_37, %c0_38] : memref<8x8x128xf32, #tpu.memory_space<vmem>>, vector<1x8x128xf32>
      %85 = vector.shape_cast %84 : vector<1x8x128xf32> to vector<8x128xf32>
      %86 = vector.shape_cast %82 : vector<8x128xf32> to vector<1x8x128xf32>
      tpu.vector_store %arg7[%83, %c0_37, %c0_38], %86 {strides = array<i32>} : memref<8x8x128xf32, #tpu.memory_space<vmem>>, vector<1x8x128xf32>,
      %c1_i32 = arith.constant 1 : i32
      %c0_39 = arith.constant 0 : index
      %c0_40 = arith.constant 0 : index
      %87 = vector.load %arg9[%c0_39, %c0_40] : memref<8x128xf32, #tpu.memory_space<vmem>>, vector<8x128xf32>
      %c0_41 = arith.constant 0 : index
      %c0_42 = arith.constant 0 : index
      %88 = vector.load %arg10[%c0_41, %c0_42] : memref<8x128xf32, #tpu.memory_space<vmem>>, vector<8x128xf32>
      %89 = arith.index_cast %c1_i32 : i32 to index
      %c0_43 = arith.constant 0 : index
      %c0_44 = arith.constant 0 : index
      %90 = vector.load %arg8[%89, %c0_43, %c0_44] : memref<8x8x512xf32, #tpu.memory_space<vmem>>, vector<1x8x512xf32>
      %91 = vector.shape_cast %90 : vector<1x8x512xf32> to vector<8x512xf32>
      %92 = arith.truncf %87 : vector<8x128xf32> to vector<8x128xbf16>
      %cst_45 = arith.constant dense<0.000000e+00> : vector<8x512xf32>
      %93 = tpu.matmul %92, %23, %cst_45 {dimension_numbers = #tpu.dot_dimension_numbers<[1], [0], [0], [1], [0, 0, 1, 1], [], []>} : vector<8x128xbf16>, vector<128x512xbf16>, vector<8x512xf32> -> vector<8x512xf32>
      %94 = arith.addf %91, %93 : vector<8x512xf32>
      %95 = vector.extract_strided_slice %94 {offsets = [0, 0], sizes = [8, 128], strides = [1, 1]} : vector<8x512xf32> to vector<8x128xf32>
      %cst_46 = arith.constant 5.000000e-01 : f32
      %96 = vector.broadcast %cst_46 : f32 to vector<8x128xf32>
      %97 = arith.mulf %96, %95 : vector<8x128xf32>
      %98 = math.tanh %97 : vector<8x128xf32>
      %cst_47 = arith.constant 5.000000e-01 : f32
      %99 = vector.broadcast %cst_47 : f32 to vector<8x128xf32>
      %100 = arith.mulf %99, %98 : vector<8x128xf32>
      %cst_48 = arith.constant 5.000000e-01 : f32
      %101 = vector.broadcast %cst_48 : f32 to vector<8x128xf32>
      %102 = arith.addf %100, %101 : vector<8x128xf32>
      %103 = vector.extract_strided_slice %94 {offsets = [0, 128], sizes = [8, 128], strides = [1, 1]} : vector<8x512xf32> to vector<8x128xf32>
      %cst_49 = arith.constant 5.000000e-01 : f32
      %104 = vector.broadcast %cst_49 : f32 to vector<8x128xf32>
      %105 = arith.mulf %104, %103 : vector<8x128xf32>
      %106 = math.tanh %105 : vector<8x128xf32>
      %cst_50 = arith.constant 5.000000e-01 : f32
      %107 = vector.broadcast %cst_50 : f32 to vector<8x128xf32>
      %108 = arith.mulf %107, %106 : vector<8x128xf32>
      %cst_51 = arith.constant 5.000000e-01 : f32
      %109 = vector.broadcast %cst_51 : f32 to vector<8x128xf32>
      %110 = arith.addf %108, %109 : vector<8x128xf32>
      %111 = vector.extract_strided_slice %94 {offsets = [0, 256], sizes = [8, 128], strides = [1, 1]} : vector<8x512xf32> to vector<8x128xf32>
      %112 = math.tanh %111 : vector<8x128xf32>
      %113 = vector.extract_strided_slice %94 {offsets = [0, 384], sizes = [8, 128], strides = [1, 1]} : vector<8x512xf32> to vector<8x128xf32>
      %cst_52 = arith.constant 5.000000e-01 : f32
      %114 = vector.broadcast %cst_52 : f32 to vector<8x128xf32>
      %115 = arith.mulf %114, %113 : vector<8x128xf32>
      %116 = math.tanh %115 : vector<8x128xf32>
      %cst_53 = arith.constant 5.000000e-01 : f32
      %117 = vector.broadcast %cst_53 : f32 to vector<8x128xf32>
      %118 = arith.mulf %117, %116 : vector<8x128xf32>
      %cst_54 = arith.constant 5.000000e-01 : f32
      %119 = vector.broadcast %cst_54 : f32 to vector<8x128xf32>
      %120 = arith.addf %118, %119 : vector<8x128xf32>
      %121 = arith.mulf %110, %88 : vector<8x128xf32>
      %122 = arith.mulf %102, %112 : vector<8x128xf32>
      %123 = arith.addf %121, %122 : vector<8x128xf32>
      %124 = math.tanh %123 : vector<8x128xf32>
      %125 = arith.mulf %120, %124 : vector<8x128xf32>
      %126 = arith.addi %0, %c1_i32 : i32
      %127 = arith.index_cast %126 : i32 to index
      %128 = memref.load %arg2[%127] : memref<8xi32, #tpu.memory_space<smem>>
      %129 = vector.broadcast %128 : i32 to vector<8x1xi32>
      %130 = arith.cmpi slt, %26, %129 : vector<8x1xi32>
      %131 = vector.shape_cast %130 : vector<8x1xi1> to vector<8x1xi1>
      %132 = vector.broadcast %131 : vector<8x1xi1> to vector<8x128xi1>
      %133 = arith.select %132, %123, %88 : vector<8x128xi1>, vector<8x128xf32>
      %c0_55 = arith.constant 0 : index
      %c0_56 = arith.constant 0 : index
      %134 = vector.load %arg10[%c0_55, %c0_56] : memref<8x128xf32, #tpu.memory_space<vmem>>, vector<8x128xf32>
      tpu.vector_store %arg10[%c0_55, %c0_56], %133 {strides = array<i32>} : memref<8x128xf32, #tpu.memory_space<vmem>>, vector<8x128xf32>,
      %135 = vector.shape_cast %130 : vector<8x1xi1> to vector<8x1xi1>
      %136 = vector.broadcast %135 : vector<8x1xi1> to vector<8x128xi1>
      %137 = arith.select %136, %125, %87 : vector<8x128xi1>, vector<8x128xf32>
      %c0_57 = arith.constant 0 : index
      %c0_58 = arith.constant 0 : index
      %138 = vector.load %arg9[%c0_57, %c0_58] : memref<8x128xf32, #tpu.memory_space<vmem>>, vector<8x128xf32>
      tpu.vector_store %arg9[%c0_57, %c0_58], %137 {strides = array<i32>} : memref<8x128xf32, #tpu.memory_space<vmem>>, vector<8x128xf32>,
      %cst_59 = arith.constant 0.000000e+00 : f32
      %139 = vector.shape_cast %130 : vector<8x1xi1> to vector<8x1xi1>
      %140 = vector.broadcast %139 : vector<8x1xi1> to vector<8x128xi1>
      %141 = vector.broadcast %cst_59 : f32 to vector<8x128xf32>
      %142 = arith.select %140, %125, %141 : vector<8x128xi1>, vector<8x128xf32>
      %143 = arith.index_cast %c1_i32 : i32 to index
      %c0_60 = arith.constant 0 : index
      %c0_61 = arith.constant 0 : index
      %144 = vector.load %arg7[%143, %c0_60, %c0_61] : memref<8x8x128xf32, #tpu.memory_space<vmem>>, vector<1x8x128xf32>
      %145 = vector.shape_cast %144 : vector<1x8x128xf32> to vector<8x128xf32>
      %146 = vector.shape_cast %142 : vector<8x128xf32> to vector<1x8x128xf32>
      tpu.vector_store %arg7[%143, %c0_60, %c0_61], %146 {strides = array<i32>} : memref<8x8x128xf32, #tpu.memory_space<vmem>>, vector<1x8x128xf32>,
      %c2_i32 = arith.constant 2 : i32
      %c0_62 = arith.constant 0 : index
      %c0_63 = arith.constant 0 : index
      %147 = vector.load %arg9[%c0_62, %c0_63] : memref<8x128xf32, #tpu.memory_space<vmem>>, vector<8x128xf32>
      %c0_64 = arith.constant 0 : index
      %c0_65 = arith.constant 0 : index
      %148 = vector.load %arg10[%c0_64, %c0_65] : memref<8x128xf32, #tpu.memory_space<vmem>>, vector<8x128xf32>
      %149 = arith.index_cast %c2_i32 : i32 to index
      %c0_66 = arith.constant 0 : index
      %c0_67 = arith.constant 0 : index
      %150 = vector.load %arg8[%149, %c0_66, %c0_67] : memref<8x8x512xf32, #tpu.memory_space<vmem>>, vector<1x8x512xf32>
      %151 = vector.shape_cast %150 : vector<1x8x512xf32> to vector<8x512xf32>
      %152 = arith.truncf %147 : vector<8x128xf32> to vector<8x128xbf16>
      %cst_68 = arith.constant dense<0.000000e+00> : vector<8x512xf32>
      %153 = tpu.matmul %152, %23, %cst_68 {dimension_numbers = #tpu.dot_dimension_numbers<[1], [0], [0], [1], [0, 0, 1, 1], [], []>} : vector<8x128xbf16>, vector<128x512xbf16>, vector<8x512xf32> -> vector<8x512xf32>
      %154 = arith.addf %151, %153 : vector<8x512xf32>
      %155 = vector.extract_strided_slice %154 {offsets = [0, 0], sizes = [8, 128], strides = [1, 1]} : vector<8x512xf32> to vector<8x128xf32>
      %cst_69 = arith.constant 5.000000e-01 : f32
      %156 = vector.broadcast %cst_69 : f32 to vector<8x128xf32>
      %157 = arith.mulf %156, %155 : vector<8x128xf32>
      %158 = math.tanh %157 : vector<8x128xf32>
      %cst_70 = arith.constant 5.000000e-01 : f32
      %159 = vector.broadcast %cst_70 : f32 to vector<8x128xf32>
      %160 = arith.mulf %159, %158 : vector<8x128xf32>
      %cst_71 = arith.constant 5.000000e-01 : f32
      %161 = vector.broadcast %cst_71 : f32 to vector<8x128xf32>
      %162 = arith.addf %160, %161 : vector<8x128xf32>
      %163 = vector.extract_strided_slice %154 {offsets = [0, 128], sizes = [8, 128], strides = [1, 1]} : vector<8x512xf32> to vector<8x128xf32>
      %cst_72 = arith.constant 5.000000e-01 : f32
      %164 = vector.broadcast %cst_72 : f32 to vector<8x128xf32>
      %165 = arith.mulf %164, %163 : vector<8x128xf32>
      %166 = math.tanh %165 : vector<8x128xf32>
      %cst_73 = arith.constant 5.000000e-01 : f32
      %167 = vector.broadcast %cst_73 : f32 to vector<8x128xf32>
      %168 = arith.mulf %167, %166 : vector<8x128xf32>
      %cst_74 = arith.constant 5.000000e-01 : f32
      %169 = vector.broadcast %cst_74 : f32 to vector<8x128xf32>
      %170 = arith.addf %168, %169 : vector<8x128xf32>
      %171 = vector.extract_strided_slice %154 {offsets = [0, 256], sizes = [8, 128], strides = [1, 1]} : vector<8x512xf32> to vector<8x128xf32>
      %172 = math.tanh %171 : vector<8x128xf32>
      %173 = vector.extract_strided_slice %154 {offsets = [0, 384], sizes = [8, 128], strides = [1, 1]} : vector<8x512xf32> to vector<8x128xf32>
      %cst_75 = arith.constant 5.000000e-01 : f32
      %174 = vector.broadcast %cst_75 : f32 to vector<8x128xf32>
      %175 = arith.mulf %174, %173 : vector<8x128xf32>
      %176 = math.tanh %175 : vector<8x128xf32>
      %cst_76 = arith.constant 5.000000e-01 : f32
      %177 = vector.broadcast %cst_76 : f32 to vector<8x128xf32>
      %178 = arith.mulf %177, %176 : vector<8x128xf32>
      %cst_77 = arith.constant 5.000000e-01 : f32
      %179 = vector.broadcast %cst_77 : f32 to vector<8x128xf32>
      %180 = arith.addf %178, %179 : vector<8x128xf32>
      %181 = arith.mulf %170, %148 : vector<8x128xf32>
      %182 = arith.mulf %162, %172 : vector<8x128xf32>
      %183 = arith.addf %181, %182 : vector<8x128xf32>
      %184 = math.tanh %183 : vector<8x128xf32>
      %185 = arith.mulf %180, %184 : vector<8x128xf32>
      %186 = arith.addi %0, %c2_i32 : i32
      %187 = arith.index_cast %186 : i32 to index
      %188 = memref.load %arg2[%187] : memref<8xi32, #tpu.memory_space<smem>>
      %189 = vector.broadcast %188 : i32 to vector<8x1xi32>
      %190 = arith.cmpi slt, %26, %189 : vector<8x1xi32>
      %191 = vector.shape_cast %190 : vector<8x1xi1> to vector<8x1xi1>
      %192 = vector.broadcast %191 : vector<8x1xi1> to vector<8x128xi1>
      %193 = arith.select %192, %183, %148 : vector<8x128xi1>, vector<8x128xf32>
      %c0_78 = arith.constant 0 : index
      %c0_79 = arith.constant 0 : index
      %194 = vector.load %arg10[%c0_78, %c0_79] : memref<8x128xf32, #tpu.memory_space<vmem>>, vector<8x128xf32>
      tpu.vector_store %arg10[%c0_78, %c0_79], %193 {strides = array<i32>} : memref<8x128xf32, #tpu.memory_space<vmem>>, vector<8x128xf32>,
      %195 = vector.shape_cast %190 : vector<8x1xi1> to vector<8x1xi1>
      %196 = vector.broadcast %195 : vector<8x1xi1> to vector<8x128xi1>
      %197 = arith.select %196, %185, %147 : vector<8x128xi1>, vector<8x128xf32>
      %c0_80 = arith.constant 0 : index
      %c0_81 = arith.constant 0 : index
      %198 = vector.load %arg9[%c0_80, %c0_81] : memref<8x128xf32, #tpu.memory_space<vmem>>, vector<8x128xf32>
      tpu.vector_store %arg9[%c0_80, %c0_81], %197 {strides = array<i32>} : memref<8x128xf32, #tpu.memory_space<vmem>>, vector<8x128xf32>,
      %cst_82 = arith.constant 0.000000e+00 : f32
      %199 = vector.shape_cast %190 : vector<8x1xi1> to vector<8x1xi1>
      %200 = vector.broadcast %199 : vector<8x1xi1> to vector<8x128xi1>
      %201 = vector.broadcast %cst_82 : f32 to vector<8x128xf32>
      %202 = arith.select %200, %185, %201 : vector<8x128xi1>, vector<8x128xf32>
      %203 = arith.index_cast %c2_i32 : i32 to index
      %c0_83 = arith.constant 0 : index
      %c0_84 = arith.constant 0 : index
      %204 = vector.load %arg7[%203, %c0_83, %c0_84] : memref<8x8x128xf32, #tpu.memory_space<vmem>>, vector<1x8x128xf32>
      %205 = vector.shape_cast %204 : vector<1x8x128xf32> to vector<8x128xf32>
      %206 = vector.shape_cast %202 : vector<8x128xf32> to vector<1x8x128xf32>
      tpu.vector_store %arg7[%203, %c0_83, %c0_84], %206 {strides = array<i32>} : memref<8x8x128xf32, #tpu.memory_space<vmem>>, vector<1x8x128xf32>,
      %c3_i32 = arith.constant 3 : i32
      %c0_85 = arith.constant 0 : index
      %c0_86 = arith.constant 0 : index
      %207 = vector.load %arg9[%c0_85, %c0_86] : memref<8x128xf32, #tpu.memory_space<vmem>>, vector<8x128xf32>
      %c0_87 = arith.constant 0 : index
      %c0_88 = arith.constant 0 : index
      %208 = vector.load %arg10[%c0_87, %c0_88] : memref<8x128xf32, #tpu.memory_space<vmem>>, vector<8x128xf32>
      %209 = arith.index_cast %c3_i32 : i32 to index
      %c0_89 = arith.constant 0 : index
      %c0_90 = arith.constant 0 : index
      %210 = vector.load %arg8[%209, %c0_89, %c0_90] : memref<8x8x512xf32, #tpu.memory_space<vmem>>, vector<1x8x512xf32>
      %211 = vector.shape_cast %210 : vector<1x8x512xf32> to vector<8x512xf32>
      %212 = arith.truncf %207 : vector<8x128xf32> to vector<8x128xbf16>
      %cst_91 = arith.constant dense<0.000000e+00> : vector<8x512xf32>
      %213 = tpu.matmul %212, %23, %cst_91 {dimension_numbers = #tpu.dot_dimension_numbers<[1], [0], [0], [1], [0, 0, 1, 1], [], []>} : vector<8x128xbf16>, vector<128x512xbf16>, vector<8x512xf32> -> vector<8x512xf32>
      %214 = arith.addf %211, %213 : vector<8x512xf32>
      %215 = vector.extract_strided_slice %214 {offsets = [0, 0], sizes = [8, 128], strides = [1, 1]} : vector<8x512xf32> to vector<8x128xf32>
      %cst_92 = arith.constant 5.000000e-01 : f32
      %216 = vector.broadcast %cst_92 : f32 to vector<8x128xf32>
      %217 = arith.mulf %216, %215 : vector<8x128xf32>
      %218 = math.tanh %217 : vector<8x128xf32>
      %cst_93 = arith.constant 5.000000e-01 : f32
      %219 = vector.broadcast %cst_93 : f32 to vector<8x128xf32>
      %220 = arith.mulf %219, %218 : vector<8x128xf32>
      %cst_94 = arith.constant 5.000000e-01 : f32
      %221 = vector.broadcast %cst_94 : f32 to vector<8x128xf32>
      %222 = arith.addf %220, %221 : vector<8x128xf32>
      %223 = vector.extract_strided_slice %214 {offsets = [0, 128], sizes = [8, 128], strides = [1, 1]} : vector<8x512xf32> to vector<8x128xf32>
      %cst_95 = arith.constant 5.000000e-01 : f32
      %224 = vector.broadcast %cst_95 : f32 to vector<8x128xf32>
      %225 = arith.mulf %224, %223 : vector<8x128xf32>
      %226 = math.tanh %225 : vector<8x128xf32>
      %cst_96 = arith.constant 5.000000e-01 : f32
      %227 = vector.broadcast %cst_96 : f32 to vector<8x128xf32>
      %228 = arith.mulf %227, %226 : vector<8x128xf32>
      %cst_97 = arith.constant 5.000000e-01 : f32
      %229 = vector.broadcast %cst_97 : f32 to vector<8x128xf32>
      %230 = arith.addf %228, %229 : vector<8x128xf32>
      %231 = vector.extract_strided_slice %214 {offsets = [0, 256], sizes = [8, 128], strides = [1, 1]} : vector<8x512xf32> to vector<8x128xf32>
      %232 = math.tanh %231 : vector<8x128xf32>
      %233 = vector.extract_strided_slice %214 {offsets = [0, 384], sizes = [8, 128], strides = [1, 1]} : vector<8x512xf32> to vector<8x128xf32>
      %cst_98 = arith.constant 5.000000e-01 : f32
      %234 = vector.broadcast %cst_98 : f32 to vector<8x128xf32>
      %235 = arith.mulf %234, %233 : vector<8x128xf32>
      %236 = math.tanh %235 : vector<8x128xf32>
      %cst_99 = arith.constant 5.000000e-01 : f32
      %237 = vector.broadcast %cst_99 : f32 to vector<8x128xf32>
      %238 = arith.mulf %237, %236 : vector<8x128xf32>
      %cst_100 = arith.constant 5.000000e-01 : f32
      %239 = vector.broadcast %cst_100 : f32 to vector<8x128xf32>
      %240 = arith.addf %238, %239 : vector<8x128xf32>
      %241 = arith.mulf %230, %208 : vector<8x128xf32>
      %242 = arith.mulf %222, %232 : vector<8x128xf32>
      %243 = arith.addf %241, %242 : vector<8x128xf32>
      %244 = math.tanh %243 : vector<8x128xf32>
      %245 = arith.mulf %240, %244 : vector<8x128xf32>
      %246 = arith.addi %0, %c3_i32 : i32
      %247 = arith.index_cast %246 : i32 to index
      %248 = memref.load %arg2[%247] : memref<8xi32, #tpu.memory_space<smem>>
      %249 = vector.broadcast %248 : i32 to vector<8x1xi32>
      %250 = arith.cmpi slt, %26, %249 : vector<8x1xi32>
      %251 = vector.shape_cast %250 : vector<8x1xi1> to vector<8x1xi1>
      %252 = vector.broadcast %251 : vector<8x1xi1> to vector<8x128xi1>
      %253 = arith.select %252, %243, %208 : vector<8x128xi1>, vector<8x128xf32>
      %c0_101 = arith.constant 0 : index
      %c0_102 = arith.constant 0 : index
      %254 = vector.load %arg10[%c0_101, %c0_102] : memref<8x128xf32, #tpu.memory_space<vmem>>, vector<8x128xf32>
      tpu.vector_store %arg10[%c0_101, %c0_102], %253 {strides = array<i32>} : memref<8x128xf32, #tpu.memory_space<vmem>>, vector<8x128xf32>,
      %255 = vector.shape_cast %250 : vector<8x1xi1> to vector<8x1xi1>
      %256 = vector.broadcast %255 : vector<8x1xi1> to vector<8x128xi1>
      %257 = arith.select %256, %245, %207 : vector<8x128xi1>, vector<8x128xf32>
      %c0_103 = arith.constant 0 : index
      %c0_104 = arith.constant 0 : index
      %258 = vector.load %arg9[%c0_103, %c0_104] : memref<8x128xf32, #tpu.memory_space<vmem>>, vector<8x128xf32>
      tpu.vector_store %arg9[%c0_103, %c0_104], %257 {strides = array<i32>} : memref<8x128xf32, #tpu.memory_space<vmem>>, vector<8x128xf32>,
      %cst_105 = arith.constant 0.000000e+00 : f32
      %259 = vector.shape_cast %250 : vector<8x1xi1> to vector<8x1xi1>
      %260 = vector.broadcast %259 : vector<8x1xi1> to vector<8x128xi1>
      %261 = vector.broadcast %cst_105 : f32 to vector<8x128xf32>
      %262 = arith.select %260, %245, %261 : vector<8x128xi1>, vector<8x128xf32>
      %263 = arith.index_cast %c3_i32 : i32 to index
      %c0_106 = arith.constant 0 : index
      %c0_107 = arith.constant 0 : index
      %264 = vector.load %arg7[%263, %c0_106, %c0_107] : memref<8x8x128xf32, #tpu.memory_space<vmem>>, vector<1x8x128xf32>
      %265 = vector.shape_cast %264 : vector<1x8x128xf32> to vector<8x128xf32>
      %266 = vector.shape_cast %262 : vector<8x128xf32> to vector<1x8x128xf32>
      tpu.vector_store %arg7[%263, %c0_106, %c0_107], %266 {strides = array<i32>} : memref<8x8x128xf32, #tpu.memory_space<vmem>>, vector<1x8x128xf32>,
      %c4_i32 = arith.constant 4 : i32
      %c0_108 = arith.constant 0 : index
      %c0_109 = arith.constant 0 : index
      %267 = vector.load %arg9[%c0_108, %c0_109] : memref<8x128xf32, #tpu.memory_space<vmem>>, vector<8x128xf32>
      %c0_110 = arith.constant 0 : index
      %c0_111 = arith.constant 0 : index
      %268 = vector.load %arg10[%c0_110, %c0_111] : memref<8x128xf32, #tpu.memory_space<vmem>>, vector<8x128xf32>
      %269 = arith.index_cast %c4_i32 : i32 to index
      %c0_112 = arith.constant 0 : index
      %c0_113 = arith.constant 0 : index
      %270 = vector.load %arg8[%269, %c0_112, %c0_113] : memref<8x8x512xf32, #tpu.memory_space<vmem>>, vector<1x8x512xf32>
      %271 = vector.shape_cast %270 : vector<1x8x512xf32> to vector<8x512xf32>
      %272 = arith.truncf %267 : vector<8x128xf32> to vector<8x128xbf16>
      %cst_114 = arith.constant dense<0.000000e+00> : vector<8x512xf32>
      %273 = tpu.matmul %272, %23, %cst_114 {dimension_numbers = #tpu.dot_dimension_numbers<[1], [0], [0], [1], [0, 0, 1, 1], [], []>} : vector<8x128xbf16>, vector<128x512xbf16>, vector<8x512xf32> -> vector<8x512xf32>
      %274 = arith.addf %271, %273 : vector<8x512xf32>
      %275 = vector.extract_strided_slice %274 {offsets = [0, 0], sizes = [8, 128], strides = [1, 1]} : vector<8x512xf32> to vector<8x128xf32>
      %cst_115 = arith.constant 5.000000e-01 : f32
      %276 = vector.broadcast %cst_115 : f32 to vector<8x128xf32>
      %277 = arith.mulf %276, %275 : vector<8x128xf32>
      %278 = math.tanh %277 : vector<8x128xf32>
      %cst_116 = arith.constant 5.000000e-01 : f32
      %279 = vector.broadcast %cst_116 : f32 to vector<8x128xf32>
      %280 = arith.mulf %279, %278 : vector<8x128xf32>
      %cst_117 = arith.constant 5.000000e-01 : f32
      %281 = vector.broadcast %cst_117 : f32 to vector<8x128xf32>
      %282 = arith.addf %280, %281 : vector<8x128xf32>
      %283 = vector.extract_strided_slice %274 {offsets = [0, 128], sizes = [8, 128], strides = [1, 1]} : vector<8x512xf32> to vector<8x128xf32>
      %cst_118 = arith.constant 5.000000e-01 : f32
      %284 = vector.broadcast %cst_118 : f32 to vector<8x128xf32>
      %285 = arith.mulf %284, %283 : vector<8x128xf32>
      %286 = math.tanh %285 : vector<8x128xf32>
      %cst_119 = arith.constant 5.000000e-01 : f32
      %287 = vector.broadcast %cst_119 : f32 to vector<8x128xf32>
      %288 = arith.mulf %287, %286 : vector<8x128xf32>
      %cst_120 = arith.constant 5.000000e-01 : f32
      %289 = vector.broadcast %cst_120 : f32 to vector<8x128xf32>
      %290 = arith.addf %288, %289 : vector<8x128xf32>
      %291 = vector.extract_strided_slice %274 {offsets = [0, 256], sizes = [8, 128], strides = [1, 1]} : vector<8x512xf32> to vector<8x128xf32>
      %292 = math.tanh %291 : vector<8x128xf32>
      %293 = vector.extract_strided_slice %274 {offsets = [0, 384], sizes = [8, 128], strides = [1, 1]} : vector<8x512xf32> to vector<8x128xf32>
      %cst_121 = arith.constant 5.000000e-01 : f32
      %294 = vector.broadcast %cst_121 : f32 to vector<8x128xf32>
      %295 = arith.mulf %294, %293 : vector<8x128xf32>
      %296 = math.tanh %295 : vector<8x128xf32>
      %cst_122 = arith.constant 5.000000e-01 : f32
      %297 = vector.broadcast %cst_122 : f32 to vector<8x128xf32>
      %298 = arith.mulf %297, %296 : vector<8x128xf32>
      %cst_123 = arith.constant 5.000000e-01 : f32
      %299 = vector.broadcast %cst_123 : f32 to vector<8x128xf32>
      %300 = arith.addf %298, %299 : vector<8x128xf32>
      %301 = arith.mulf %290, %268 : vector<8x128xf32>
      %302 = arith.mulf %282, %292 : vector<8x128xf32>
      %303 = arith.addf %301, %302 : vector<8x128xf32>
      %304 = math.tanh %303 : vector<8x128xf32>
      %305 = arith.mulf %300, %304 : vector<8x128xf32>
      %306 = arith.addi %0, %c4_i32 : i32
      %307 = arith.index_cast %306 : i32 to index
      %308 = memref.load %arg2[%307] : memref<8xi32, #tpu.memory_space<smem>>
      %309 = vector.broadcast %308 : i32 to vector<8x1xi32>
      %310 = arith.cmpi slt, %26, %309 : vector<8x1xi32>
      %311 = vector.shape_cast %310 : vector<8x1xi1> to vector<8x1xi1>
      %312 = vector.broadcast %311 : vector<8x1xi1> to vector<8x128xi1>
      %313 = arith.select %312, %303, %268 : vector<8x128xi1>, vector<8x128xf32>
      %c0_124 = arith.constant 0 : index
      %c0_125 = arith.constant 0 : index
      %314 = vector.load %arg10[%c0_124, %c0_125] : memref<8x128xf32, #tpu.memory_space<vmem>>, vector<8x128xf32>
      tpu.vector_store %arg10[%c0_124, %c0_125], %313 {strides = array<i32>} : memref<8x128xf32, #tpu.memory_space<vmem>>, vector<8x128xf32>,
      %315 = vector.shape_cast %310 : vector<8x1xi1> to vector<8x1xi1>
      %316 = vector.broadcast %315 : vector<8x1xi1> to vector<8x128xi1>
      %317 = arith.select %316, %305, %267 : vector<8x128xi1>, vector<8x128xf32>
      %c0_126 = arith.constant 0 : index
      %c0_127 = arith.constant 0 : index
      %318 = vector.load %arg9[%c0_126, %c0_127] : memref<8x128xf32, #tpu.memory_space<vmem>>, vector<8x128xf32>
      tpu.vector_store %arg9[%c0_126, %c0_127], %317 {strides = array<i32>} : memref<8x128xf32, #tpu.memory_space<vmem>>, vector<8x128xf32>,
      %cst_128 = arith.constant 0.000000e+00 : f32
      %319 = vector.shape_cast %310 : vector<8x1xi1> to vector<8x1xi1>
      %320 = vector.broadcast %319 : vector<8x1xi1> to vector<8x128xi1>
      %321 = vector.broadcast %cst_128 : f32 to vector<8x128xf32>
      %322 = arith.select %320, %305, %321 : vector<8x128xi1>, vector<8x128xf32>
      %323 = arith.index_cast %c4_i32 : i32 to index
      %c0_129 = arith.constant 0 : index
      %c0_130 = arith.constant 0 : index
      %324 = vector.load %arg7[%323, %c0_129, %c0_130] : memref<8x8x128xf32, #tpu.memory_space<vmem>>, vector<1x8x128xf32>
      %325 = vector.shape_cast %324 : vector<1x8x128xf32> to vector<8x128xf32>
      %326 = vector.shape_cast %322 : vector<8x128xf32> to vector<1x8x128xf32>
      tpu.vector_store %arg7[%323, %c0_129, %c0_130], %326 {strides = array<i32>} : memref<8x8x128xf32, #tpu.memory_space<vmem>>, vector<1x8x128xf32>,
      %c5_i32 = arith.constant 5 : i32
      %c0_131 = arith.constant 0 : index
      %c0_132 = arith.constant 0 : index
      %327 = vector.load %arg9[%c0_131, %c0_132] : memref<8x128xf32, #tpu.memory_space<vmem>>, vector<8x128xf32>
      %c0_133 = arith.constant 0 : index
      %c0_134 = arith.constant 0 : index
      %328 = vector.load %arg10[%c0_133, %c0_134] : memref<8x128xf32, #tpu.memory_space<vmem>>, vector<8x128xf32>
      %329 = arith.index_cast %c5_i32 : i32 to index
      %c0_135 = arith.constant 0 : index
      %c0_136 = arith.constant 0 : index
      %330 = vector.load %arg8[%329, %c0_135, %c0_136] : memref<8x8x512xf32, #tpu.memory_space<vmem>>, vector<1x8x512xf32>
      %331 = vector.shape_cast %330 : vector<1x8x512xf32> to vector<8x512xf32>
      %332 = arith.truncf %327 : vector<8x128xf32> to vector<8x128xbf16>
      %cst_137 = arith.constant dense<0.000000e+00> : vector<8x512xf32>
      %333 = tpu.matmul %332, %23, %cst_137 {dimension_numbers = #tpu.dot_dimension_numbers<[1], [0], [0], [1], [0, 0, 1, 1], [], []>} : vector<8x128xbf16>, vector<128x512xbf16>, vector<8x512xf32> -> vector<8x512xf32>
      %334 = arith.addf %331, %333 : vector<8x512xf32>
      %335 = vector.extract_strided_slice %334 {offsets = [0, 0], sizes = [8, 128], strides = [1, 1]} : vector<8x512xf32> to vector<8x128xf32>
      %cst_138 = arith.constant 5.000000e-01 : f32
      %336 = vector.broadcast %cst_138 : f32 to vector<8x128xf32>
      %337 = arith.mulf %336, %335 : vector<8x128xf32>
      %338 = math.tanh %337 : vector<8x128xf32>
      %cst_139 = arith.constant 5.000000e-01 : f32
      %339 = vector.broadcast %cst_139 : f32 to vector<8x128xf32>
      %340 = arith.mulf %339, %338 : vector<8x128xf32>
      %cst_140 = arith.constant 5.000000e-01 : f32
      %341 = vector.broadcast %cst_140 : f32 to vector<8x128xf32>
      %342 = arith.addf %340, %341 : vector<8x128xf32>
      %343 = vector.extract_strided_slice %334 {offsets = [0, 128], sizes = [8, 128], strides = [1, 1]} : vector<8x512xf32> to vector<8x128xf32>
      %cst_141 = arith.constant 5.000000e-01 : f32
      %344 = vector.broadcast %cst_141 : f32 to vector<8x128xf32>
      %345 = arith.mulf %344, %343 : vector<8x128xf32>
      %346 = math.tanh %345 : vector<8x128xf32>
      %cst_142 = arith.constant 5.000000e-01 : f32
      %347 = vector.broadcast %cst_142 : f32 to vector<8x128xf32>
      %348 = arith.mulf %347, %346 : vector<8x128xf32>
      %cst_143 = arith.constant 5.000000e-01 : f32
      %349 = vector.broadcast %cst_143 : f32 to vector<8x128xf32>
      %350 = arith.addf %348, %349 : vector<8x128xf32>
      %351 = vector.extract_strided_slice %334 {offsets = [0, 256], sizes = [8, 128], strides = [1, 1]} : vector<8x512xf32> to vector<8x128xf32>
      %352 = math.tanh %351 : vector<8x128xf32>
      %353 = vector.extract_strided_slice %334 {offsets = [0, 384], sizes = [8, 128], strides = [1, 1]} : vector<8x512xf32> to vector<8x128xf32>
      %cst_144 = arith.constant 5.000000e-01 : f32
      %354 = vector.broadcast %cst_144 : f32 to vector<8x128xf32>
      %355 = arith.mulf %354, %353 : vector<8x128xf32>
      %356 = math.tanh %355 : vector<8x128xf32>
      %cst_145 = arith.constant 5.000000e-01 : f32
      %357 = vector.broadcast %cst_145 : f32 to vector<8x128xf32>
      %358 = arith.mulf %357, %356 : vector<8x128xf32>
      %cst_146 = arith.constant 5.000000e-01 : f32
      %359 = vector.broadcast %cst_146 : f32 to vector<8x128xf32>
      %360 = arith.addf %358, %359 : vector<8x128xf32>
      %361 = arith.mulf %350, %328 : vector<8x128xf32>
      %362 = arith.mulf %342, %352 : vector<8x128xf32>
      %363 = arith.addf %361, %362 : vector<8x128xf32>
      %364 = math.tanh %363 : vector<8x128xf32>
      %365 = arith.mulf %360, %364 : vector<8x128xf32>
      %366 = arith.addi %0, %c5_i32 : i32
      %367 = arith.index_cast %366 : i32 to index
      %368 = memref.load %arg2[%367] : memref<8xi32, #tpu.memory_space<smem>>
      %369 = vector.broadcast %368 : i32 to vector<8x1xi32>
      %370 = arith.cmpi slt, %26, %369 : vector<8x1xi32>
      %371 = vector.shape_cast %370 : vector<8x1xi1> to vector<8x1xi1>
      %372 = vector.broadcast %371 : vector<8x1xi1> to vector<8x128xi1>
      %373 = arith.select %372, %363, %328 : vector<8x128xi1>, vector<8x128xf32>
      %c0_147 = arith.constant 0 : index
      %c0_148 = arith.constant 0 : index
      %374 = vector.load %arg10[%c0_147, %c0_148] : memref<8x128xf32, #tpu.memory_space<vmem>>, vector<8x128xf32>
      tpu.vector_store %arg10[%c0_147, %c0_148], %373 {strides = array<i32>} : memref<8x128xf32, #tpu.memory_space<vmem>>, vector<8x128xf32>,
      %375 = vector.shape_cast %370 : vector<8x1xi1> to vector<8x1xi1>
      %376 = vector.broadcast %375 : vector<8x1xi1> to vector<8x128xi1>
      %377 = arith.select %376, %365, %327 : vector<8x128xi1>, vector<8x128xf32>
      %c0_149 = arith.constant 0 : index
      %c0_150 = arith.constant 0 : index
      %378 = vector.load %arg9[%c0_149, %c0_150] : memref<8x128xf32, #tpu.memory_space<vmem>>, vector<8x128xf32>
      tpu.vector_store %arg9[%c0_149, %c0_150], %377 {strides = array<i32>} : memref<8x128xf32, #tpu.memory_space<vmem>>, vector<8x128xf32>,
      %cst_151 = arith.constant 0.000000e+00 : f32
      %379 = vector.shape_cast %370 : vector<8x1xi1> to vector<8x1xi1>
      %380 = vector.broadcast %379 : vector<8x1xi1> to vector<8x128xi1>
      %381 = vector.broadcast %cst_151 : f32 to vector<8x128xf32>
      %382 = arith.select %380, %365, %381 : vector<8x128xi1>, vector<8x128xf32>
      %383 = arith.index_cast %c5_i32 : i32 to index
      %c0_152 = arith.constant 0 : index
      %c0_153 = arith.constant 0 : index
      %384 = vector.load %arg7[%383, %c0_152, %c0_153] : memref<8x8x128xf32, #tpu.memory_space<vmem>>, vector<1x8x128xf32>
      %385 = vector.shape_cast %384 : vector<1x8x128xf32> to vector<8x128xf32>
      %386 = vector.shape_cast %382 : vector<8x128xf32> to vector<1x8x128xf32>
      tpu.vector_store %arg7[%383, %c0_152, %c0_153], %386 {strides = array<i32>} : memref<8x8x128xf32, #tpu.memory_space<vmem>>, vector<1x8x128xf32>,
      %c6_i32 = arith.constant 6 : i32
      %c0_154 = arith.constant 0 : index
      %c0_155 = arith.constant 0 : index
      %387 = vector.load %arg9[%c0_154, %c0_155] : memref<8x128xf32, #tpu.memory_space<vmem>>, vector<8x128xf32>
      %c0_156 = arith.constant 0 : index
      %c0_157 = arith.constant 0 : index
      %388 = vector.load %arg10[%c0_156, %c0_157] : memref<8x128xf32, #tpu.memory_space<vmem>>, vector<8x128xf32>
      %389 = arith.index_cast %c6_i32 : i32 to index
      %c0_158 = arith.constant 0 : index
      %c0_159 = arith.constant 0 : index
      %390 = vector.load %arg8[%389, %c0_158, %c0_159] : memref<8x8x512xf32, #tpu.memory_space<vmem>>, vector<1x8x512xf32>
      %391 = vector.shape_cast %390 : vector<1x8x512xf32> to vector<8x512xf32>
      %392 = arith.truncf %387 : vector<8x128xf32> to vector<8x128xbf16>
      %cst_160 = arith.constant dense<0.000000e+00> : vector<8x512xf32>
      %393 = tpu.matmul %392, %23, %cst_160 {dimension_numbers = #tpu.dot_dimension_numbers<[1], [0], [0], [1], [0, 0, 1, 1], [], []>} : vector<8x128xbf16>, vector<128x512xbf16>, vector<8x512xf32> -> vector<8x512xf32>
      %394 = arith.addf %391, %393 : vector<8x512xf32>
      %395 = vector.extract_strided_slice %394 {offsets = [0, 0], sizes = [8, 128], strides = [1, 1]} : vector<8x512xf32> to vector<8x128xf32>
      %cst_161 = arith.constant 5.000000e-01 : f32
      %396 = vector.broadcast %cst_161 : f32 to vector<8x128xf32>
      %397 = arith.mulf %396, %395 : vector<8x128xf32>
      %398 = math.tanh %397 : vector<8x128xf32>
      %cst_162 = arith.constant 5.000000e-01 : f32
      %399 = vector.broadcast %cst_162 : f32 to vector<8x128xf32>
      %400 = arith.mulf %399, %398 : vector<8x128xf32>
      %cst_163 = arith.constant 5.000000e-01 : f32
      %401 = vector.broadcast %cst_163 : f32 to vector<8x128xf32>
      %402 = arith.addf %400, %401 : vector<8x128xf32>
      %403 = vector.extract_strided_slice %394 {offsets = [0, 128], sizes = [8, 128], strides = [1, 1]} : vector<8x512xf32> to vector<8x128xf32>
      %cst_164 = arith.constant 5.000000e-01 : f32
      %404 = vector.broadcast %cst_164 : f32 to vector<8x128xf32>
      %405 = arith.mulf %404, %403 : vector<8x128xf32>
      %406 = math.tanh %405 : vector<8x128xf32>
      %cst_165 = arith.constant 5.000000e-01 : f32
      %407 = vector.broadcast %cst_165 : f32 to vector<8x128xf32>
      %408 = arith.mulf %407, %406 : vector<8x128xf32>
      %cst_166 = arith.constant 5.000000e-01 : f32
      %409 = vector.broadcast %cst_166 : f32 to vector<8x128xf32>
      %410 = arith.addf %408, %409 : vector<8x128xf32>
      %411 = vector.extract_strided_slice %394 {offsets = [0, 256], sizes = [8, 128], strides = [1, 1]} : vector<8x512xf32> to vector<8x128xf32>
      %412 = math.tanh %411 : vector<8x128xf32>
      %413 = vector.extract_strided_slice %394 {offsets = [0, 384], sizes = [8, 128], strides = [1, 1]} : vector<8x512xf32> to vector<8x128xf32>
      %cst_167 = arith.constant 5.000000e-01 : f32
      %414 = vector.broadcast %cst_167 : f32 to vector<8x128xf32>
      %415 = arith.mulf %414, %413 : vector<8x128xf32>
      %416 = math.tanh %415 : vector<8x128xf32>
      %cst_168 = arith.constant 5.000000e-01 : f32
      %417 = vector.broadcast %cst_168 : f32 to vector<8x128xf32>
      %418 = arith.mulf %417, %416 : vector<8x128xf32>
      %cst_169 = arith.constant 5.000000e-01 : f32
      %419 = vector.broadcast %cst_169 : f32 to vector<8x128xf32>
      %420 = arith.addf %418, %419 : vector<8x128xf32>
      %421 = arith.mulf %410, %388 : vector<8x128xf32>
      %422 = arith.mulf %402, %412 : vector<8x128xf32>
      %423 = arith.addf %421, %422 : vector<8x128xf32>
      %424 = math.tanh %423 : vector<8x128xf32>
      %425 = arith.mulf %420, %424 : vector<8x128xf32>
      %426 = arith.addi %0, %c6_i32 : i32
      %427 = arith.index_cast %426 : i32 to index
      %428 = memref.load %arg2[%427] : memref<8xi32, #tpu.memory_space<smem>>
      %429 = vector.broadcast %428 : i32 to vector<8x1xi32>
      %430 = arith.cmpi slt, %26, %429 : vector<8x1xi32>
      %431 = vector.shape_cast %430 : vector<8x1xi1> to vector<8x1xi1>
      %432 = vector.broadcast %431 : vector<8x1xi1> to vector<8x128xi1>
      %433 = arith.select %432, %423, %388 : vector<8x128xi1>, vector<8x128xf32>
      %c0_170 = arith.constant 0 : index
      %c0_171 = arith.constant 0 : index
      %434 = vector.load %arg10[%c0_170, %c0_171] : memref<8x128xf32, #tpu.memory_space<vmem>>, vector<8x128xf32>
      tpu.vector_store %arg10[%c0_170, %c0_171], %433 {strides = array<i32>} : memref<8x128xf32, #tpu.memory_space<vmem>>, vector<8x128xf32>,
      %435 = vector.shape_cast %430 : vector<8x1xi1> to vector<8x1xi1>
      %436 = vector.broadcast %435 : vector<8x1xi1> to vector<8x128xi1>
      %437 = arith.select %436, %425, %387 : vector<8x128xi1>, vector<8x128xf32>
      %c0_172 = arith.constant 0 : index
      %c0_173 = arith.constant 0 : index
      %438 = vector.load %arg9[%c0_172, %c0_173] : memref<8x128xf32, #tpu.memory_space<vmem>>, vector<8x128xf32>
      tpu.vector_store %arg9[%c0_172, %c0_173], %437 {strides = array<i32>} : memref<8x128xf32, #tpu.memory_space<vmem>>, vector<8x128xf32>,
      %cst_174 = arith.constant 0.000000e+00 : f32
      %439 = vector.shape_cast %430 : vector<8x1xi1> to vector<8x1xi1>
      %440 = vector.broadcast %439 : vector<8x1xi1> to vector<8x128xi1>
      %441 = vector.broadcast %cst_174 : f32 to vector<8x128xf32>
      %442 = arith.select %440, %425, %441 : vector<8x128xi1>, vector<8x128xf32>
      %443 = arith.index_cast %c6_i32 : i32 to index
      %c0_175 = arith.constant 0 : index
      %c0_176 = arith.constant 0 : index
      %444 = vector.load %arg7[%443, %c0_175, %c0_176] : memref<8x8x128xf32, #tpu.memory_space<vmem>>, vector<1x8x128xf32>
      %445 = vector.shape_cast %444 : vector<1x8x128xf32> to vector<8x128xf32>
      %446 = vector.shape_cast %442 : vector<8x128xf32> to vector<1x8x128xf32>
      tpu.vector_store %arg7[%443, %c0_175, %c0_176], %446 {strides = array<i32>} : memref<8x8x128xf32, #tpu.memory_space<vmem>>, vector<1x8x128xf32>,
      %c7_i32 = arith.constant 7 : i32
      %c0_177 = arith.constant 0 : index
      %c0_178 = arith.constant 0 : index
      %447 = vector.load %arg9[%c0_177, %c0_178] : memref<8x128xf32, #tpu.memory_space<vmem>>, vector<8x128xf32>
      %c0_179 = arith.constant 0 : index
      %c0_180 = arith.constant 0 : index
      %448 = vector.load %arg10[%c0_179, %c0_180] : memref<8x128xf32, #tpu.memory_space<vmem>>, vector<8x128xf32>
      %449 = arith.index_cast %c7_i32 : i32 to index
      %c0_181 = arith.constant 0 : index
      %c0_182 = arith.constant 0 : index
      %450 = vector.load %arg8[%449, %c0_181, %c0_182] : memref<8x8x512xf32, #tpu.memory_space<vmem>>, vector<1x8x512xf32>
      %451 = vector.shape_cast %450 : vector<1x8x512xf32> to vector<8x512xf32>
      %452 = arith.truncf %447 : vector<8x128xf32> to vector<8x128xbf16>
      %cst_183 = arith.constant dense<0.000000e+00> : vector<8x512xf32>
      %453 = tpu.matmul %452, %23, %cst_183 {dimension_numbers = #tpu.dot_dimension_numbers<[1], [0], [0], [1], [0, 0, 1, 1], [], []>} : vector<8x128xbf16>, vector<128x512xbf16>, vector<8x512xf32> -> vector<8x512xf32>
      %454 = arith.addf %451, %453 : vector<8x512xf32>
      %455 = vector.extract_strided_slice %454 {offsets = [0, 0], sizes = [8, 128], strides = [1, 1]} : vector<8x512xf32> to vector<8x128xf32>
      %cst_184 = arith.constant 5.000000e-01 : f32
      %456 = vector.broadcast %cst_184 : f32 to vector<8x128xf32>
      %457 = arith.mulf %456, %455 : vector<8x128xf32>
      %458 = math.tanh %457 : vector<8x128xf32>
      %cst_185 = arith.constant 5.000000e-01 : f32
      %459 = vector.broadcast %cst_185 : f32 to vector<8x128xf32>
      %460 = arith.mulf %459, %458 : vector<8x128xf32>
      %cst_186 = arith.constant 5.000000e-01 : f32
      %461 = vector.broadcast %cst_186 : f32 to vector<8x128xf32>
      %462 = arith.addf %460, %461 : vector<8x128xf32>
      %463 = vector.extract_strided_slice %454 {offsets = [0, 128], sizes = [8, 128], strides = [1, 1]} : vector<8x512xf32> to vector<8x128xf32>
      %cst_187 = arith.constant 5.000000e-01 : f32
      %464 = vector.broadcast %cst_187 : f32 to vector<8x128xf32>
      %465 = arith.mulf %464, %463 : vector<8x128xf32>
      %466 = math.tanh %465 : vector<8x128xf32>
      %cst_188 = arith.constant 5.000000e-01 : f32
      %467 = vector.broadcast %cst_188 : f32 to vector<8x128xf32>
      %468 = arith.mulf %467, %466 : vector<8x128xf32>
      %cst_189 = arith.constant 5.000000e-01 : f32
      %469 = vector.broadcast %cst_189 : f32 to vector<8x128xf32>
      %470 = arith.addf %468, %469 : vector<8x128xf32>
      %471 = vector.extract_strided_slice %454 {offsets = [0, 256], sizes = [8, 128], strides = [1, 1]} : vector<8x512xf32> to vector<8x128xf32>
      %472 = math.tanh %471 : vector<8x128xf32>
      %473 = vector.extract_strided_slice %454 {offsets = [0, 384], sizes = [8, 128], strides = [1, 1]} : vector<8x512xf32> to vector<8x128xf32>
      %cst_190 = arith.constant 5.000000e-01 : f32
      %474 = vector.broadcast %cst_190 : f32 to vector<8x128xf32>
      %475 = arith.mulf %474, %473 : vector<8x128xf32>
      %476 = math.tanh %475 : vector<8x128xf32>
      %cst_191 = arith.constant 5.000000e-01 : f32
      %477 = vector.broadcast %cst_191 : f32 to vector<8x128xf32>
      %478 = arith.mulf %477, %476 : vector<8x128xf32>
      %cst_192 = arith.constant 5.000000e-01 : f32
      %479 = vector.broadcast %cst_192 : f32 to vector<8x128xf32>
      %480 = arith.addf %478, %479 : vector<8x128xf32>
      %481 = arith.mulf %470, %448 : vector<8x128xf32>
      %482 = arith.mulf %462, %472 : vector<8x128xf32>
      %483 = arith.addf %481, %482 : vector<8x128xf32>
      %484 = math.tanh %483 : vector<8x128xf32>
      %485 = arith.mulf %480, %484 : vector<8x128xf32>
      %486 = arith.addi %0, %c7_i32 : i32
      %487 = arith.index_cast %486 : i32 to index
      %488 = memref.load %arg2[%487] : memref<8xi32, #tpu.memory_space<smem>>
      %489 = vector.broadcast %488 : i32 to vector<8x1xi32>
      %490 = arith.cmpi slt, %26, %489 : vector<8x1xi32>
      %491 = vector.shape_cast %490 : vector<8x1xi1> to vector<8x1xi1>
      %492 = vector.broadcast %491 : vector<8x1xi1> to vector<8x128xi1>
      %493 = arith.select %492, %483, %448 : vector<8x128xi1>, vector<8x128xf32>
      %c0_193 = arith.constant 0 : index
      %c0_194 = arith.constant 0 : index
      %494 = vector.load %arg10[%c0_193, %c0_194] : memref<8x128xf32, #tpu.memory_space<vmem>>, vector<8x128xf32>
      tpu.vector_store %arg10[%c0_193, %c0_194], %493 {strides = array<i32>} : memref<8x128xf32, #tpu.memory_space<vmem>>, vector<8x128xf32>,
      %495 = vector.shape_cast %490 : vector<8x1xi1> to vector<8x1xi1>
      %496 = vector.broadcast %495 : vector<8x1xi1> to vector<8x128xi1>
      %497 = arith.select %496, %485, %447 : vector<8x128xi1>, vector<8x128xf32>
      %c0_195 = arith.constant 0 : index
      %c0_196 = arith.constant 0 : index
      %498 = vector.load %arg9[%c0_195, %c0_196] : memref<8x128xf32, #tpu.memory_space<vmem>>, vector<8x128xf32>
      tpu.vector_store %arg9[%c0_195, %c0_196], %497 {strides = array<i32>} : memref<8x128xf32, #tpu.memory_space<vmem>>, vector<8x128xf32>,
      %cst_197 = arith.constant 0.000000e+00 : f32
      %499 = vector.shape_cast %490 : vector<8x1xi1> to vector<8x1xi1>
      %500 = vector.broadcast %499 : vector<8x1xi1> to vector<8x128xi1>
      %501 = vector.broadcast %cst_197 : f32 to vector<8x128xf32>
      %502 = arith.select %500, %485, %501 : vector<8x128xi1>, vector<8x128xf32>
      %503 = arith.index_cast %c7_i32 : i32 to index
      %c0_198 = arith.constant 0 : index
      %c0_199 = arith.constant 0 : index
      %504 = vector.load %arg7[%503, %c0_198, %c0_199] : memref<8x8x128xf32, #tpu.memory_space<vmem>>, vector<1x8x128xf32>
      %505 = vector.shape_cast %504 : vector<1x8x128xf32> to vector<8x128xf32>
      %506 = vector.shape_cast %502 : vector<8x128xf32> to vector<1x8x128xf32>
      tpu.vector_store %arg7[%503, %c0_198, %c0_199], %506 {strides = array<i32>} : memref<8x8x128xf32, #tpu.memory_space<vmem>>, vector<1x8x128xf32>,
      %c8_i32_200 = arith.constant 8 : i32
    } else {
    }
    return
  }
  func.func @transform_0(%arg0: i32, %arg1: i32, %arg2: memref<8xi32, #tpu.memory_space<smem>>) -> (i32, i32, i32) {
    %c0_i32 = arith.constant 0 : i32
    %c0_i32_0 = arith.constant 0 : i32
    return %arg1, %arg0, %c0_i32 : i32, i32, i32
  }
  func.func @transform_1(%arg0: i32, %arg1: i32, %arg2: memref<8xi32, #tpu.memory_space<smem>>) -> (i32, i32) {
    %c0_i32 = arith.constant 0 : i32
    %c0_i32_0 = arith.constant 0 : i32
    %c0_i32_1 = arith.constant 0 : i32
    return %c0_i32, %c0_i32_0 : i32, i32
  }
  func.func @transform_2(%arg0: i32, %arg1: i32, %arg2: memref<8xi32, #tpu.memory_space<smem>>) -> (i32, i32) {
    %c0_i32 = arith.constant 0 : i32
    %c0_i32_0 = arith.constant 0 : i32
    %c0_i32_1 = arith.constant 0 : i32
    return %c0_i32, %c0_i32_0 : i32, i32
  }
  func.func @transform_3(%arg0: i32, %arg1: i32, %arg2: memref<8xi32, #tpu.memory_space<smem>>) -> (i32, i32) {
    %c0_i32 = arith.constant 0 : i32
    %c0_i32_0 = arith.constant 0 : i32
    %c0_i32_1 = arith.constant 0 : i32
    return %c0_i32, %c0_i32_0 : i32, i32
  }
  func.func @transform_4(%arg0: i32, %arg1: i32, %arg2: memref<8xi32, #tpu.memory_space<smem>>) -> (i32, i32, i32) {
    %c0_i32 = arith.constant 0 : i32
    %c0_i32_0 = arith.constant 0 : i32
    return %arg1, %arg0, %c0_i32 : i32, i32, i32
  }
}

</mosaic_0001>

<bundles_post_ra>
// kernel: batch_rnn_forward.2
= control target key start
LH: loop header
LB: loop body
LE: loop exit
PB: predicated region body
PF: predicated region fallthrough
CT: control target
= control target key end

     0   :  { %v21_v0 = vlaneseq  ;;  %v207_v1 = vmov 0   ;;  %vm17_vm8 = vcmask 122880   ;;  %v208_v19 = vmov 0.0   ;;  %s315_s1 = inlined_call_operand.vmem [shape: s32[8,1,1], index: 1, kind: input, shape index: {}]   ;;  %s316_s2 = inlined_call_operand.vmem [shape: f32[1,1,16], index: 2, kind: output, shape index: {0}]   ;;  %s317_s3 = inlined_call_operand.vmem [shape: f32[1,1,16], index: 3, kind: output, shape index: {1}]   ;;  %s318_s0 = inlined_call_operand.vmem [shape: f32[8,8,16], index: 0, kind: input, shape index: {}]  }
   0x1   :  { %206 = vset.pattern.permute.xlu1 %v207_v1  ;;  %205 = vset.pattern.permute.xlu0 %v207_v1  ;;  %v197_v2 = vld [vmem:[%s315_s1 + $0x2] ss:$0 sm:$0xff]  ;;  %v195_v3 = vld [vmem:[%s315_s1] ss:$0 sm:$0xff]  ;;  %v198_v4 = vld [vmem:[%s315_s1 + $0x3] ss:$0 sm:$0xff] }
   0x2   :  { %v22_v5 = vshrl.u32 %v21_v0, 7  ;;  %v196_v6 = vld [vmem:[%s315_s1 + $0x1] ss:$0 sm:$0xff]  ;;  %v200_v9 = vld [vmem:[%s315_s1 + $0x5] ss:$0 sm:$0xff]  ;;  %v75_v23 = vld [vmem:[%s318_s0 + $0x10] sm:$0xff] }
   0x3   :  { %v199_v10 = vld [vmem:[%s315_s1 + $0x4] ss:$0 sm:$0xff]  ;;  %v202_v13 = vld [vmem:[%s315_s1 + $0x7] ss:$0 sm:$0xff]  ;;  %v201_v14 = vld [vmem:[%s315_s1 + $0x6] ss:$0 sm:$0xff] }
   0x4   :  { %vm67_vm0 = vcmp.lt.s32.totalorder %v22_v5, %v197_v2  ;;  %vm65_vm1 = vcmp.lt.s32.totalorder %v22_v5, %v195_v3  ;;  %vm68_vm2 = vcmp.lt.s32.totalorder %v22_v5, %v198_v4  ;;  %vm66_vm3 = vcmp.lt.s32.totalorder %v22_v5, %v196_v6  ;;  %18 = vst.msk [vmem:[%s316_s2] sm:$0x1] %vm17_vm8, %v208_v19  ;;  %v73_v20 = vld [vmem:[%s318_s0] sm:$0xff]  ;;  %v76_v25 = vld [vmem:[%s318_s0 + $0x18] sm:$0xff]  ;;  %v74_v26 = vld [vmem:[%s318_s0 + $0x8] sm:$0xff] }
   0x5   :  { %v83_v7 = vsel %vm67_vm0, 1, %v207_v1  ;;  %v81_v8 = vsel %vm65_vm1, 1, %v207_v1  ;;  %v84_v11 = vsel %vm68_vm2, 1, %v207_v1  ;;  %v82_v12 = vsel %vm66_vm3, 1, %v207_v1  ;;  %19 = vst.msk [vmem:[%s317_s3] sm:$0x1] %vm17_vm8, %v208_v19 }
   0x6   :  { %96 = vperm.xlu1 %206, %v83_v7   ;;  %90 = vperm.xlu0 %205, %v81_v8   ;;  %vm70_vm4 = vcmp.lt.s32.totalorder %v22_v5, %v200_v9  ;;  %vm69_vm5 = vcmp.lt.s32.totalorder %v22_v5, %v199_v10  ;;  %vm72_vm6 = vcmp.lt.s32.totalorder %v22_v5, %v202_v13  ;;  %vm130_vm11 = vcmask 130048   ;;  %v78_v37 = vld [vmem:[%s318_s0 + $0x28] sm:$0xff]  ;;  %v77_v38 = vld [vmem:[%s318_s0 + $0x20] sm:$0xff]  ;;  %v80_v53 = vld [vmem:[%s318_s0 + $0x38] sm:$0xff] }
   0x7   :  { %v86_v15 = vsel %vm70_vm4, 1, %v207_v1  ;;  %v85_v16 = vsel %vm69_vm5, 1, %v207_v1  ;;  %vm71_vm7 = vcmp.lt.s32.totalorder %v22_v5, %v201_v14  ;;  %v88_v17 = vsel %vm72_vm6, 1, %v207_v1  ;;  %v79_v54 = vld [vmem:[%s318_s0 + $0x30] sm:$0xff] }
   0x8   :  { %v87_v18 = vsel %vm71_vm7, 1, %v207_v1 }
   0xa   :  { %99 = vperm.xlu1 %206, %v84_v11   ;;  %93 = vperm.xlu0 %205, %v82_v12  }
   0xe   :  { %105 = vperm.xlu1 %206, %v86_v15   ;;  %102 = vperm.xlu0 %205, %v85_v16  }
  0x12   :  { %111 = vperm.xlu1 %206, %v88_v17   ;;  %108 = vperm.xlu0 %205, %v87_v18  }
  0x81   :  { %v97_v21 = vpop.permute.xlu1 %96  ;;  %v91_v22 = vpop.permute.xlu0 %90 }
  0x82   :  { %vm115_vm9 = vcmp.eq.s32.totalorder %v97_v21, 1  ;;  %vm113_vm10 = vcmp.eq.s32.totalorder %v91_v22, 1 }
  0x83   :  { %v121_v24 = vsel %vm113_vm10, %v73_v20, 0.0  ;;  %v123_v27 = vsel %vm115_vm9, %v75_v23, 0.0 }
  0x84   :  { %v156_v30 = vmul.f32 %v121_v24, %v121_v24  ;;  %v158_v33 = vmul.f32 %v123_v27, %v123_v27  ;;  %v131_v34 = vsel %vm130_vm11, %v121_v24, 0.0  ;;  %v134_v39 = vsel %vm130_vm11, %v123_v27, 0.0  ;;  %v129_v27 = vld [vmem:[%s316_s2] sm:$0x1] }
  0x85   :  { %v100_v28 = vpop.permute.xlu1 %99  ;;  %v94_v29 = vpop.permute.xlu0 %93 }
  0x86   :  { %vm116_vm12 = vcmp.eq.s32.totalorder %v100_v28, 1  ;;  %vm114_vm13 = vcmp.eq.s32.totalorder %v94_v29, 1  ;;  %v164_v44 = vsel %vm130_vm11, %v156_v30, 0.0  ;;  %v167_v50 = vsel %vm130_vm11, %v158_v33, 0.0  ;;  %v155_v30 = vld [vmem:[%s317_s3] sm:$0x1] }
  0x87   :  { %v124_v31 = vsel %vm116_vm12, %v76_v25, 0.0  ;;  %v122_v32 = vsel %vm114_vm13, %v74_v26, 0.0 }
  0x88   :  { %v132_v35 = vsel %vm130_vm11, %v122_v32, 0.0  ;;  %v157_v36 = vmul.f32 %v122_v32, %v122_v32  ;;  %v159_v40 = vmul.f32 %v124_v31, %v124_v31  ;;  %v136_v51 = vsel %vm130_vm11, %v124_v31, 0.0 }
  0x89   :  { %v133_v41 = vadd.f32 %v132_v35, %v131_v34  ;;  %v106_v42 = vpop.permute.xlu1 %105  ;;  %v103_v43 = vpop.permute.xlu0 %102 }
  0x8a   :  { %v165_v45 = vsel %vm130_vm11, %v157_v36, 0.0  ;;  %vm118_vm14 = vcmp.eq.s32.totalorder %v106_v42, 1  ;;  %vm117_vm15 = vcmp.eq.s32.totalorder %v103_v43, 1  ;;  %v169_v55 = vsel %vm130_vm11, %v159_v40, 0.0 }
  0x8b   :  { %v135_v46 = vadd.f32 %v134_v39, %v133_v41  ;;  %v166_v47 = vadd.f32 %v165_v45, %v164_v44  ;;  %v126_v48 = vsel %vm118_vm14, %v78_v37, 0.0  ;;  %v125_v49 = vsel %vm117_vm15, %v77_v38, 0.0 }
  0x8c   :  { %v160_v52 = vmul.f32 %v125_v49, %v125_v49  ;;  %v161_v60 = vmul.f32 %v126_v48, %v126_v48  ;;  %v138_v61 = vsel %vm130_vm11, %v125_v49, 0.0  ;;  %v140_v2 = vsel %vm130_vm11, %v126_v48, 0.0 }
  0x8d   :  { %v168_v56 = vadd.f32 %v167_v50, %v166_v47  ;;  %v137_v57 = vadd.f32 %v136_v51, %v135_v46  ;;  %v112_v58 = vpop.permute.xlu1 %111  ;;  %v109_v59 = vpop.permute.xlu0 %108 }
  0x8e   :  { %vm120_vm0 = vcmp.eq.s32.totalorder %v112_v58, 1  ;;  %vm119_vm1 = vcmp.eq.s32.totalorder %v109_v59, 1  ;;  %v171_v3 = vsel %vm130_vm11, %v160_v52, 0.0  ;;  %v173_v7 = vsel %vm130_vm11, %v161_v60, 0.0 }
  0x8f   :  { %v139_v62 = vadd.f32 %v138_v61, %v137_v57  ;;  %v170_v63 = vadd.f32 %v169_v55, %v168_v56  ;;  %v128_v0 = vsel %vm120_vm0, %v80_v53, 0.0  ;;  %v127_v1 = vsel %vm119_vm1, %v79_v54, 0.0 }
  0x90   :  { %v162_v4 = vmul.f32 %v127_v1, %v127_v1  ;;  %v163_v8 = vmul.f32 %v128_v0, %v128_v0  ;;  %v142_v9 = vsel %vm130_vm11, %v127_v1, 0.0  ;;  %v144_v12 = vsel %vm130_vm11, %v128_v0, 0.0 }
  0x91   :  { %v172_v5 = vadd.f32 %v171_v3, %v170_v63  ;;  %v141_v6 = vadd.f32 %v140_v2, %v139_v62 }
  0x92   :  { %v175_v13 = vsel %vm130_vm11, %v162_v4, 0.0  ;;  %v177_v16 = vsel %vm130_vm11, %v163_v8, 0.0 }
  0x93   :  { %v143_v10 = vadd.f32 %v142_v9, %v141_v6  ;;  %v174_v11 = vadd.f32 %v173_v7, %v172_v5 }
  0x95   :  { %v145_v14 = vadd.f32 %v144_v12, %v143_v10  ;;  %v176_v15 = vadd.f32 %v175_v13, %v174_v11 }
  0x97   :  { %v146_v17 = vrot.slane %v145_v14, 4  ;;  %v178_v18 = vadd.f32 %v177_v16, %v176_v15 }
  0x99   :  { %v147_v19 = vadd.f32 %v146_v17, %v145_v14  ;;  %v179_v20 = vrot.slane %v178_v18, 4 }
  0x9b   :  { %v148_v21 = vrot.slane %v147_v19, 2  ;;  %v180_v22 = vadd.f32 %v179_v20, %v178_v18 }
  0x9d   :  { %v149_v23 = vadd.f32 %v148_v21, %v147_v19  ;;  %v181_v24 = vrot.slane %v180_v22, 2 }
  0x9f   :  { %v150_v25 = vrot.slane %v149_v23, 1  ;;  %v182_v26 = vadd.f32 %v181_v24, %v180_v22 }
  0xa1   :  { %v151_v28 = vadd.f32 %v150_v25, %v149_v23  ;;  %v183_v29 = vrot.slane %v182_v26, 1 }
  0xa3   :  { %v152_v31 = vadd.f32 %v151_v28, %v129_v27  ;;  %v184_v32 = vadd.f32 %v183_v29, %v182_v26 }
  0xa5   :  { %154 = vst.msk [vmem:[%s316_s2] sm:$0x1] %vm17_vm8, %v152_v31  ;;  %v185_v33 = vadd.f32 %v184_v32, %v155_v30 }
  0xa7   :  { %186 = vst.msk [vmem:[%s317_s3] sm:$0x1] %vm17_vm8, %v185_v33 }

// kernel: batch_rnn_forward.3
= control target key start
LH: loop header
LB: loop body
LE: loop exit
PB: predicated region body
PF: predicated region fallthrough
CT: control target
= control target key end

     0   :  { %s2661_s0 = inlined_call_operand.vmem [shape: s32[8], index: 0, kind: input, shape index: {}]   ;;  %s2662_s1 = inlined_call_operand.vmem [shape: f32[8,8,16], index: 1, kind: input, shape index: {}]   ;;  %s2663_s2 = inlined_call_operand.vmem [shape: bf16[16,512], index: 2, kind: input, shape index: {}]   ;;  %s2664_s3 = inlined_call_operand.vmem [shape: f32[1,512], index: 3, kind: input, shape index: {}]   ;;  %s2665_s4 = inlined_call_operand.vmem [shape: bf16[128,512], index: 4, kind: input, shape index: {}]   ;;  %s2666_s5 = inlined_call_operand.vmem [shape: f32[8,8,128], index: 5, kind: output, shape index: {}]  }
   0x1   :  { %s10_s20 = sshll.u32 %s2661_s0, 4  ;;  %s11_s20 = int_to_ptr.vmem [resolvable:$true] %s10_s20 }
   0x2   :  { %s1726_s21 = scalar_lea.vmem %s11_s20, 16  ;;  %p1731_p1 = scmp.lt.s32.totalorder %s11_s20, %s11_s20 }
   0x3   :  { %p1727_p0 = scmp.ne.s32.totalorder %s11_s20, %s1726_s21  ;;  %p1732_p2 = scmp.lt.s32.totalorder %s1726_s21, %s1726_s21 }
   0x5   :  { %p1733_p3 = por %p1732_p2, %p1731_p1 }
   0x7   :  { %p1734_p4 = pnand %p1733_p3, %p1727_p0 }
   0x9   :  { %1737 = shalt.err (!%p1734_p4)  }
   0xa   :  { %s1740_s22 = smov [#allocation6]  }
   0xb   :  { %13 = dma.vmem_to_smem %s11_s20, 16, %s1740_s22, [#allocation5] }
   0xc   :  { %1738 = dma.done.wait [#allocation5], 16 }
   0xd   :  { %1739 = vsyncadd [#allocation5], 4294967280 }
   0xe   :  { %15 = sfence }
   0xf   :  { %s33_s23 = sld [smem:[#allocation6]]  ;;  %v1741_v0 = vmov 0.0  }
  0x10   :  { %31 = vst [vmem:[#allocation3] sm:$0xff] %v1741_v0  ;;  %32 = vst [vmem:[#allocation4] sm:$0xff] %v1741_v0 }
  0x15   :  { %p1496_p5 = scmp.gt.s32.totalorder %s33_s23, 0 }
  0x17   :  { %37 = sbr.rel (%p1496_p5) target bundleno = 33 (0x21), region = 25 }
  0x1c   :  { %v1742_v1 = vmov 0.0  }
  0x1d   :  { %38 = vst [vmem:[%s2666_s5] sm:$0xff] %v1742_v1  ;;  %39 = vst [vmem:[%s2666_s5 + $0x8] sm:$0xff] %v1742_v1 }
  0x1e   :  { %40 = vst [vmem:[%s2666_s5 + $0x10] sm:$0xff] %v1742_v1  ;;  %41 = vst [vmem:[%s2666_s5 + $0x18] sm:$0xff] %v1742_v1 }
  0x1f   :  { %42 = vst [vmem:[%s2666_s5 + $0x20] sm:$0xff] %v1742_v1  ;;  %43 = vst [vmem:[%s2666_s5 + $0x28] sm:$0xff] %v1742_v1 }
  0x20   :  { %44 = vst [vmem:[%s2666_s5 + $0x30] sm:$0xff] %v1742_v1  ;;  %45 = vst [vmem:[%s2666_s5 + $0x38] sm:$0xff] %v1742_v1 }
  0x21 PF:  { %p1497_p6 = scmp.le.s32.totalorder %s33_s23, 0 }
  0x23   :  { %49 = sbr.rel (%p1497_p6) target bundleno = 1997 (0x7cd), region = 29 }
  0x28   :  { %v1560_v2 = vld [vmem:[%s2663_s2 + $0x4] ss:$16 sps:$4 sm:$0xff]   ;;  %v1562_v3 = vld [vmem:[%s2663_s2 + $0xc] ss:$16 sps:$4 sm:$0xff]   ;;  %v2667_v4 = vmov 0   ;;  %vm108_vm0 = vcmask 130048   ;;  %v68_v53 = vlaneseq }
  0x29   :  { %153 = vmatprep.mubr.bf16.mxu0 %v2667_v4  ;;  %226 = vmatprep.mubr.bf16.mxu1 %v2667_v4  ;;  %v1564_v5 = vld [vmem:[%s2663_s2] ss:$16 sps:$4 sm:$0xff]   ;;  %v1565_v6 = vld [vmem:[%s2663_s2 + $0x8] ss:$16 sps:$4 sm:$0xff]   ;;  %v1824_v10 = vld [vmem:[%s2665_s4 + $0xe4] ss:$16 sps:$4 sm:$0xff]  }
  0x2a   :  { %135 = vmatprep.subr.bf16.mxu0 %v1560_v2  ;;  %v50_v7 = vld [vmem:[%s2662_s1] sm:$0xff]  ;;  %208 = vmatprep.subr.bf16.mxu1 %v1562_v3  ;;  %v51_v8 = vld [vmem:[%s2662_s1 + $0x8] sm:$0xff]  ;;  %v52_v18 = vld [vmem:[%s2662_s1 + $0x10] sm:$0xff]  ;;  %v2087_v54 = vshrl.u32 %v68_v53, 7  ;;  %s1542_s0 = sld [smem:[#allocation6 + $0x1]] }
  0x2b   :  { %136 = vmatpush1.bf16.msra.mxu0 %v1564_v5  ;;  %209 = vmatpush1.bf16.msra.mxu1 %v1565_v6  ;;  %v58_v9 = vpack.c.bf16 %v51_v8, %v50_v7  ;;  %v1829_v11 = vld [vmem:[%s2665_s4 + $0xec] ss:$16 sps:$4 sm:$0xff]   ;;  %v1834_v12 = vld [vmem:[%s2665_s4 + $0xe0] ss:$16 sps:$4 sm:$0xff]   ;;  %v1839_v13 = vld [vmem:[%s2665_s4 + $0xe8] ss:$16 sps:$4 sm:$0xff]  }
  0x2c   :  { %502 = vmatprep.subr.bf16.mxu0 %v1824_v10  ;;  %v1845_v14 = vld [vmem:[%s2665_s4 + $0xc4] ss:$16 sps:$4 sm:$0xff]   ;;  %v1852_v15 = vld [vmem:[%s2665_s4 + $0xcc] ss:$16 sps:$4 sm:$0xff]   ;;  %543 = vmatprep.subr.bf16.mxu1 %v1829_v11  ;;  %v1859_v16 = vld [vmem:[%s2665_s4 + $0xc0] ss:$16 sps:$4 sm:$0xff]  }
  0x2d   :  { %v1864_v17 = vld [vmem:[%s2665_s4 + $0xc8] ss:$16 sps:$4 sm:$0xff]   ;;  %v1879_v20 = vld [vmem:[%s2665_s4 + $0xa4] ss:$16 sps:$4 sm:$0xff]   ;;  %v1885_v22 = vld [vmem:[%s2665_s4 + $0xac] ss:$16 sps:$4 sm:$0xff]  }
  0x2e   :  { %1502 = vmatmul.mubr.msk.bf16.vlgmr.msra.gmra.mxu0 %vm108_vm0, %v58_v9  ;;  %1506 = vmatmul.mubr.msk.bf16.vlgmr.msra.gmra.mxu1 %vm108_vm0, %v58_v9  ;;  %v53_v19 = vld [vmem:[%s2662_s1 + $0x18] sm:$0xff]  ;;  %v1890_v23 = vld [vmem:[%s2665_s4 + $0xa0] ss:$16 sps:$4 sm:$0xff]   ;;  %v1903_v25 = vld [vmem:[%s2665_s4 + $0x84] ss:$16 sps:$4 sm:$0xff]   ;;  %v78_v55 = vsub.s32 2, %v2087_v54 }
  0x2f   :  { %503 = vmatpush1.bf16.msra.mxu0 %v1834_v12  ;;  %544 = vmatpush1.bf16.msra.mxu1 %v1839_v13  ;;  %v59_v21 = vpack.c.bf16 %v53_v19, %v52_v18  ;;  %v1896_v24 = vld [vmem:[%s2665_s4 + $0xa8] ss:$16 sps:$4 sm:$0xff]   ;;  %v1909_v26 = vld [vmem:[%s2665_s4 + $0x8c] ss:$16 sps:$4 sm:$0xff]   ;;  %v1914_v27 = vld [vmem:[%s2665_s4 + $0x80] ss:$16 sps:$4 sm:$0xff]  }
  0x30   :  { %504 = vmatprep.subr.bf16.mxu0 %v1845_v14  ;;  %545 = vmatprep.subr.bf16.mxu1 %v1852_v15  ;;  %v54_v28 = vld [vmem:[%s2662_s1 + $0x20] sm:$0xff]  ;;  %v55_v29 = vld [vmem:[%s2662_s1 + $0x28] sm:$0xff]  ;;  %v56_v40 = vld [vmem:[%s2662_s1 + $0x30] sm:$0xff]  ;;  %v70_v56 = vsub.s32 0, %v2087_v54  ;;  %v82_v57 = vsub.s32 3, %v2087_v54  ;;  %v74_v62 = vsub.s32 1, %v2087_v54 }
  0x31   :  { %163 = vmatprep.mubr.bf16.mxu0 %v2667_v4  ;;  %236 = vmatprep.mubr.bf16.mxu1 %v2667_v4  ;;  %v1931_v30 = vld [vmem:[%s2665_s4 + $0x88] ss:$16 sps:$4 sm:$0xff]   ;;  %v1936_v31 = vld [vmem:[%s2665_s4 + $0x64] ss:$16 sps:$4 sm:$0xff]   ;;  %v1943_v32 = vld [vmem:[%s2665_s4 + $0x6c] ss:$16 sps:$4 sm:$0xff]   ;;  %v60_v33 = vpack.c.bf16 %v55_v29, %v54_v28 }
  0x32   :  { %v1949_v34 = vld [vmem:[%s2665_s4 + $0x60] ss:$16 sps:$4 sm:$0xff]   ;;  %v1954_v35 = vld [vmem:[%s2665_s4 + $0x68] ss:$16 sps:$4 sm:$0xff]   ;;  %v1961_v36 = vld [vmem:[%s2665_s4 + $0x44] ss:$16 sps:$4 sm:$0xff]  }
  0x33   :  { %505 = vmatpush1.bf16.msra.mxu0 %v1859_v16  ;;  %546 = vmatpush1.bf16.msra.mxu1 %v1864_v17  ;;  %v1967_v37 = vld [vmem:[%s2665_s4 + $0x4c] ss:$16 sps:$4 sm:$0xff]   ;;  %v1974_v38 = vld [vmem:[%s2665_s4 + $0x40] ss:$16 sps:$4 sm:$0xff]   ;;  %v1979_v39 = vld [vmem:[%s2665_s4 + $0x48] ss:$16 sps:$4 sm:$0xff]  }
  0x34   :  { %506 = vmatprep.subr.bf16.mxu0 %v1879_v20  ;;  %547 = vmatprep.subr.bf16.mxu1 %v1885_v22  ;;  %v57_v41 = vld [vmem:[%s2662_s1 + $0x38] sm:$0xff]  ;;  %v1994_v42 = vld [vmem:[%s2665_s4 + $0x24] ss:$16 sps:$4 sm:$0xff]   ;;  %v2007_v45 = vld [vmem:[%s2665_s4 + $0x20] ss:$16 sps:$4 sm:$0xff]   ;;  %s1544_s26 = sld [smem:[#allocation6 + $0x2]] }
  0x35   :  { %v2001_v43 = vld [vmem:[%s2665_s4 + $0x2c] ss:$16 sps:$4 sm:$0xff]   ;;  %v61_v44 = vpack.c.bf16 %v57_v41, %v56_v40  ;;  %v2014_v46 = vld [vmem:[%s2665_s4 + $0x28] ss:$16 sps:$4 sm:$0xff]   ;;  %v2019_v47 = vld [vmem:[%s2665_s4 + $0x4] ss:$16 sps:$4 sm:$0xff]  }
  0x36   :  { %1503 = vmatmul.mubr.msk.bf16.gmra.mxu0 %vm108_vm0, %v59_v21  ;;  %1507 = vmatmul.mubr.msk.bf16.gmra.mxu1 %vm108_vm0, %v59_v21  ;;  %v2025_v48 = vld [vmem:[%s2665_s4 + $0xc] ss:$16 sps:$4 sm:$0xff]   ;;  %v2033_v49 = vld [vmem:[%s2665_s4] ss:$16 sps:$4 sm:$0xff]   ;;  %v2043_v51 = vld [vmem:[%s2665_s4 + $0x8] ss:$16 sps:$4 sm:$0xff]  }
  0x37   :  { %507 = vmatpush1.bf16.msra.mxu0 %v1890_v23  ;;  %173 = vmatprep.mubr.bf16.mxu0 %v2667_v4  ;;  %v2036_v50 = vld [vmem:[#allocation3] sm:$0xff]  ;;  %s1546_s28 = sld [smem:[#allocation6 + $0x3]] }
  0x38   :  { %548 = vmatpush1.bf16.msra.mxu1 %v1896_v24  ;;  %508 = vmatprep.subr.bf16.mxu0 %v1903_v25  ;;  %v341_v52 = vpack.c.bf16 %v2036_v50, %v2036_v50  ;;  %v66_v58 = vld [vmem:[%s2664_s3] sm:$0xf]  ;;  %s606_s3 = sld [smem:[#allocation6]] }
  0x39   :  { %549 = vmatprep.subr.bf16.mxu1 %v1909_v26  ;;  %246 = vmatprep.mubr.bf16.mxu1 %v2667_v4  ;;  %v2099_v61 = vrot.slane %v66_v58, %v78_v55  ;;  %v71_v1 = vrot.slane %v66_v58, %v70_v56  ;;  %v2106_v2 = vrot.slane %v66_v58, %v82_v57  ;;  %s1548_s13 = sld [smem:[#allocation6 + $0x4]] }
  0x3a   :  { %v75_v6 = vrot.slane %v66_v58, %v74_v62  ;;  %s1552_s16 = sld [smem:[#allocation6 + $0x6]] }
  0x3b   :  { %509 = vmatpush1.bf16.msra.mxu0 %v1914_v27  ;;  %s1554_s19 = sld [smem:[#allocation6 + $0x7]] }
  0x3c   :  { %550 = vmatpush1.bf16.msra.mxu1 %v1931_v30  ;;  %510 = vmatprep.subr.bf16.mxu0 %v1936_v31 }
  0x3d   :  { %551 = vmatprep.subr.bf16.mxu1 %v1943_v32 }
  0x3e   :  { %1504 = vmatmul.mubr.msk.bf16.gmra.mxu0 %vm108_vm0, %v60_v33  ;;  %1508 = vmatmul.mubr.msk.bf16.gmra.mxu1 %vm108_vm0, %v60_v33 }
  0x3f   :  { %511 = vmatpush1.bf16.msra.mxu0 %v1949_v34  ;;  %183 = vmatprep.mubr.bf16.mxu0 %v2667_v4 }
  0x40   :  { %552 = vmatpush1.bf16.msra.mxu1 %v1954_v35  ;;  %512 = vmatprep.subr.bf16.mxu0 %v1961_v36 }
  0x41   :  { %553 = vmatprep.subr.bf16.mxu1 %v1967_v37  ;;  %256 = vmatprep.mubr.bf16.mxu1 %v2667_v4 }
  0x43   :  { %513 = vmatpush1.bf16.msra.mxu0 %v1974_v38 }
  0x44   :  { %554 = vmatpush1.bf16.msra.mxu1 %v1979_v39  ;;  %514 = vmatprep.subr.bf16.mxu0 %v1994_v42 }
  0x45   :  { %555 = vmatprep.subr.bf16.mxu1 %v2001_v43 }
  0x46   :  { %1505 = vmatmul.mubr.msk.bf16.gmra.mxu0 %vm108_vm0, %v61_v44  ;;  %1509 = vmatmul.mubr.msk.bf16.gmra.mxu1 %vm108_vm0, %v61_v44 }
  0x47   :  { %515 = vmatpush1.bf16.msra.mxu0 %v2007_v45  ;;  %534 = vmatprep.mubr.bf16.mxu0 %v2667_v4 }
  0x48   :  { %556 = vmatpush1.bf16.msra.mxu1 %v2014_v46  ;;  %516 = vmatprep.subr.bf16.mxu0 %v2019_v47 }
  0x49   :  { %557 = vmatprep.subr.bf16.mxu1 %v2025_v48  ;;  %575 = vmatprep.mubr.bf16.mxu1 %v2667_v4 }
  0x4b   :  { %517 = vmatpush1.bf16.msra.mxu0 %v2033_v49 }
  0x4c   :  { %558 = vmatpush1.bf16.msra.mxu1 %v2043_v51  ;;  %625 = vmatprep.subr.bf16.mxu0 %v1824_v10 }
  0x4d   :  { %666 = vmatprep.subr.bf16.mxu1 %v1829_v11 }
  0x4e   :  { %535 = vmatmul.mubr.bf16.vlgmr.msra.gmra.mxu0 %v341_v52 }
  0x4f   :  { %576 = vmatmul.mubr.bf16.vlgmr.msra.gmra.mxu1 %v341_v52  ;;  %626 = vmatpush1.bf16.msra.mxu0 %v1834_v12 }
  0x50   :  { %667 = vmatpush1.bf16.msra.mxu1 %v1839_v13  ;;  %627 = vmatprep.subr.bf16.mxu0 %v1845_v14 }
  0x51   :  { %668 = vmatprep.subr.bf16.mxu1 %v1852_v15  ;;  %657 = vmatprep.mubr.bf16.mxu0 %v2667_v4 }
  0x52   :  { %698 = vmatprep.mubr.bf16.mxu1 %v2667_v4 }
  0x53   :  { %628 = vmatpush1.bf16.msra.mxu0 %v1859_v16 }
  0x54   :  { %669 = vmatpush1.bf16.msra.mxu1 %v1864_v17  ;;  %629 = vmatprep.subr.bf16.mxu0 %v1879_v20 }
  0x55   :  { %670 = vmatprep.subr.bf16.mxu1 %v1885_v22 }
  0x57   :  { %630 = vmatpush1.bf16.msra.mxu0 %v1890_v23 }
  0x58   :  { %671 = vmatpush1.bf16.msra.mxu1 %v1896_v24  ;;  %631 = vmatprep.subr.bf16.mxu0 %v1903_v25 }
  0x59   :  { %672 = vmatprep.subr.bf16.mxu1 %v1909_v26 }
  0x5b   :  { %632 = vmatpush1.bf16.msra.mxu0 %v1914_v27 }
  0x5c   :  { %673 = vmatpush1.bf16.msra.mxu1 %v1931_v30  ;;  %633 = vmatprep.subr.bf16.mxu0 %v1936_v31 }
  0x5d   :  { %674 = vmatprep.subr.bf16.mxu1 %v1943_v32 }
  0x5f   :  { %634 = vmatpush1.bf16.msra.mxu0 %v1949_v34 }
  0x60   :  { %675 = vmatpush1.bf16.msra.mxu1 %v1954_v35  ;;  %635 = vmatprep.subr.bf16.mxu0 %v1961_v36 }
  0x61   :  { %676 = vmatprep.subr.bf16.mxu1 %v1967_v37 }
  0x63   :  { %636 = vmatpush1.bf16.msra.mxu0 %v1974_v38 }
  0x64   :  { %677 = vmatpush1.bf16.msra.mxu1 %v1979_v39  ;;  %637 = vmatprep.subr.bf16.mxu0 %v1994_v42 }
  0x65   :  { %678 = vmatprep.subr.bf16.mxu1 %v2001_v43 }
  0x67   :  { %638 = vmatpush1.bf16.msra.mxu0 %v2007_v45 }
  0x68   :  { %679 = vmatpush1.bf16.msra.mxu1 %v2014_v46  ;;  %639 = vmatprep.subr.bf16.mxu0 %v2019_v47 }
  0x69   :  { %680 = vmatprep.subr.bf16.mxu1 %v2025_v48 }
  0x6b   :  { %640 = vmatpush1.bf16.msra.mxu0 %v2033_v49 }
  0x6c   :  { %681 = vmatpush1.bf16.msra.mxu1 %v2043_v51  ;;  %750 = vmatprep.subr.bf16.mxu0 %v1824_v10 }
  0x6d   :  { %791 = vmatprep.subr.bf16.mxu1 %v1829_v11 }
  0xee   :  { %v2095_v59 = vpop.f32.mrf.mxu0  ;;  %v2097_v60 = vpop.f32.mrf.mxu1 }
  0xf0   :  { %v2102_v63 = vpop.f32.mrf.mxu0  ;;  %v2104_v0 = vpop.f32.mrf.mxu1 }
  0xf2   :  { %v159_v3 = vpop.f32.mrf.mxu0  ;;  %v232_v5 = vpop.f32.mrf.mxu1 }
  0xf3   :  { %v2108_v7 = vadd.f32 %v159_v3, %v71_v1  ;;  %v2111_v8 = vadd.f32 %v232_v5, %v2099_v61 }
  0xf4   :  { %v161_v9 = vpop.f32.mrf.mxu0  ;;  %v234_v18 = vpop.f32.mrf.mxu1 }
  0xf5   :  { %v2113_v19 = vadd.f32 %v161_v9, %v75_v6  ;;  %v2116_v21 = vadd.f32 %v234_v18, %v2106_v2 }
  0xf6   :  { %v165_v28 = vpop.f32.mrf.mxu0  ;;  %v238_v29 = vpop.f32.mrf.mxu1 }
  0xf7   :  { %v2118_v33 = vadd.f32 %v165_v28, %v71_v1  ;;  %v2121_v40 = vadd.f32 %v238_v29, %v2099_v61 }
  0xf8   :  { %v167_v41 = vpop.f32.mrf.mxu0  ;;  %v240_v44 = vpop.f32.mrf.mxu1 }
  0xf9   :  { %v2123_v52 = vadd.f32 %v167_v41, %v75_v6  ;;  %v2126_v53 = vadd.f32 %v240_v44, %v2106_v2 }
  0xfa   :  { %v169_v55 = vpop.f32.mrf.mxu0  ;;  %v242_v56 = vpop.f32.mrf.mxu1 }
  0xfb   :  { %2669 = vst [vmem:[#allocation8_spill] sm:$0xff] %v2126_v53  ;;  %v2128_v57 = vadd.f32 %v169_v55, %v71_v1  ;;  %v2131_v58 = vadd.f32 %v242_v56, %v2099_v61 }
  0xfc   :  { %v171_v62 = vpop.f32.mrf.mxu0  ;;  %v244_v3 = vpop.f32.mrf.mxu1 }
  0xfd   :  { %2670 = vst [vmem:[#allocation9_spill] sm:$0xff] %v2128_v57  ;;  %2671 = vst [vmem:[#allocation10_spill] sm:$0xff] %v2131_v58  ;;  %v2133_v5 = vadd.f32 %v171_v62, %v75_v6  ;;  %v2136_v9 = vadd.f32 %v244_v3, %v2106_v2 }
  0xfe   :  { %v175_v18 = vpop.f32.mrf.mxu0  ;;  %v248_v28 = vpop.f32.mrf.mxu1 }
  0xff   :  { %2672 = vst [vmem:[#allocation11_spill] sm:$0xff] %v2133_v5  ;;  %2673 = vst [vmem:[#allocation12_spill] sm:$0xff] %v2136_v9  ;;  %v2138_v29 = vadd.f32 %v175_v18, %v71_v1  ;;  %v2141_v41 = vadd.f32 %v248_v28, %v2099_v61 }
 0x100   :  { %v177_v44 = vpop.f32.mrf.mxu0  ;;  %v250_v55 = vpop.f32.mrf.mxu1 }
 0x101   :  { %2674 = vst [vmem:[#allocation13_spill] sm:$0xff] %v2138_v29  ;;  %2675 = vst [vmem:[#allocation14_spill] sm:$0xff] %v2141_v41  ;;  %v2143_v4 = vadd.f32 %v177_v44, %v75_v6  ;;  %v2146_v56 = vadd.f32 %v250_v55, %v2106_v2 }
 0x102   :  { %v179_v58 = vpop.f32.mrf.mxu0  ;;  %v252_v62 = vpop.f32.mrf.mxu1 }
 0x103   :  { %2676 = vst [vmem:[#allocation15_spill] sm:$0xff] %v2143_v4  ;;  %2677 = vst [vmem:[#allocation16_spill] sm:$0xff] %v2146_v56  ;;  %v2148_v5 = vadd.f32 %v179_v58, %v71_v1  ;;  %v2151_v3 = vadd.f32 %v252_v62, %v2099_v61 }
 0x104   :  { %v181_v9 = vpop.f32.mrf.mxu0  ;;  %v254_v18 = vpop.f32.mrf.mxu1 }
 0x105   :  { %2678 = vst [vmem:[#allocation17_spill] sm:$0xff] %v2148_v5  ;;  %2679 = vst [vmem:[#allocation18_spill] sm:$0xff] %v2151_v3  ;;  %v2153_v29 = vadd.f32 %v181_v9, %v75_v6  ;;  %v2156_v28 = vadd.f32 %v254_v18, %v2106_v2 }
 0x106   :  { %v185_v41 = vpop.f32.mrf.mxu0  ;;  %v258_v44 = vpop.f32.mrf.mxu1 }
 0x107   :  { %2680 = vst [vmem:[#allocation19_spill] sm:$0xff] %v2153_v29  ;;  %2681 = vst [vmem:[#allocation20_spill] sm:$0xff] %v2156_v28  ;;  %v2158_v4 = vadd.f32 %v185_v41, %v71_v1  ;;  %v2161_v55 = vadd.f32 %v258_v44, %v2099_v61 }
 0x108   :  { %v187_v56 = vpop.f32.mrf.mxu0  ;;  %v260_v58 = vpop.f32.mrf.mxu1 }
 0x109   :  { %2682 = vst [vmem:[#allocation21_spill] sm:$0xff] %v2158_v4  ;;  %2683 = vst [vmem:[#allocation22_spill] sm:$0xff] %v2161_v55  ;;  %v2163_v5 = vadd.f32 %v187_v56, %v75_v6  ;;  %v2166_v62 = vadd.f32 %v260_v58, %v2106_v2  ;;  %v156_v4 = vadd.f32 %v2095_v59, %v71_v1 }
 0x10a   :  { %v189_v3 = vpop.f32.mrf.mxu0  ;;  %v262_v9 = vpop.f32.mrf.mxu1  ;;  %v158_v58 = vadd.f32 %v2102_v63, %v75_v6  ;;  %v231_v63 = vadd.f32 %v2104_v0, %v2106_v2 }
 0x10b   :  { %2684 = vst [vmem:[#allocation23_spill] sm:$0xff] %v2163_v5  ;;  %2685 = vst [vmem:[#allocation24_spill] sm:$0xff] %v2166_v62  ;;  %v2168_v29 = vadd.f32 %v189_v3, %v71_v1  ;;  %v2171_v18 = vadd.f32 %v262_v9, %v2099_v61 }
 0x10c   :  { %v191_v28 = vpop.f32.mrf.mxu0  ;;  %v264_v41 = vpop.f32.mrf.mxu1 }
 0x10d   :  { %2686 = vst [vmem:[#allocation25_spill] sm:$0xff] %v2168_v29  ;;  %2687 = vst [vmem:[#allocation26_spill] sm:$0xff] %v2171_v18  ;;  %v2174_v44 = vadd.f32 %v191_v28, %v75_v6  ;;  %v2177_v55 = vadd.f32 %v264_v41, %v2106_v2  ;;  %v229_v18 = vadd.f32 %v2097_v60, %v2099_v61  ;;  %v336_v60 = vld [vmem:[#allocation4] sm:$0xff] }
 0x10e   :  { %v536_v56 = vpop.f32.mrf.mxu0 }
 0x10f   :  { %2688 = vst [vmem:[#allocation27_spill] sm:$0xff] %v2174_v44  ;;  %v584_v62 = vadd.f32 %v536_v56, %v156_v4  ;;  %v577_v5 = vpop.f32.mrf.mxu1 }
 0x110   :  { %v538_v57 = vpop.f32.mrf.mxu0  ;;  %v586_v44 = vadd.f32 %v577_v5, %v229_v18 }
 0x111   :  { %v588_v3 = vmul.f32 0.5, %v584_v62  ;;  %v585_v29 = vadd.f32 %v538_v57, %v158_v58  ;;  %v579_v53 = vpop.f32.mrf.mxu1 }
 0x112   :  { %v540_v9 = vpop.f32.mrf.mxu0  ;;  %v587_v4 = vadd.f32 %v579_v53, %v231_v63 }
 0x113   :  { %1614 = vtanh.f32 %v588_v3  ;;  %v592_v59 = vmul.f32 0.5, %v585_v29  ;;  %v581_v1 = vpop.f32.mrf.mxu1  ;;  %v607_v29 = vstv %s606_s3 }
 0x114   :  { %v541_v28 = vpop.f32.mrf.mxu0  ;;  %v597_v6 = vmul.f32 0.5, %v587_v4  ;;  %vm608_vm1 = vcmp.lt.s32.totalorder %v2087_v54, %v607_v29 }
 0x115   :  { %1616 = vtanh.f32 %v592_v59  ;;  %v582_v41 = vpop.f32.mrf.mxu1 }
 0x116   :  { %1618 = vtanh.f32 %v586_v44 }
 0x117   :  { %1620 = vtanh.f32 %v597_v6 }
 0x120   :  { %v1615_v57 = vpop.eup %1614 }
 0x121   :  { %v590_v62 = vmul.f32 0.5, %v1615_v57 }
 0x122   :  { %v1617_v56 = vpop.eup %1616 }
 0x123   :  { %v591_v58 = vadd.f32 0.5, %v590_v62  ;;  %v594_v9 = vmul.f32 0.5, %v1617_v56  ;;  %v1619_v3 = vpop.eup %1618 }
 0x124   :  { %v1621_v2 = vpop.eup %1620 }
 0x125   :  { %v595_v61 = vadd.f32 0.5, %v594_v9  ;;  %v602_v18 = vmul.f32 %v1619_v3, %v591_v58  ;;  %v599_v53 = vmul.f32 0.5, %v1621_v2 }
 0x127   :  { %v601_v5 = vmul.f32 %v595_v61, %v336_v60  ;;  %v600_v44 = vadd.f32 0.5, %v599_v53 }
 0x129   :  { %v603_v59 = vadd.f32 %v602_v18, %v601_v5 }
 0x12b   :  { %1622 = vtanh.f32 %v603_v59  ;;  %v2185_v0 = vsel %vm608_vm1, %v603_v59, %v336_v60 }
 0x138   :  { %v1623_v1 = vpop.eup %1622 }
 0x139   :  { %v605_v28 = vmul.f32 %v1623_v1, %v600_v44 }
 0x13b   :  { %v2188_v41 = vsel %vm608_vm1, %v605_v28, %v2036_v50  ;;  %v615_v63 = vsel %vm608_vm1, %v605_v28, 0.0  ;;  %v2689_v50 = vmov 0  }
 0x13c   :  { %616 = vst [vmem:[%s2666_s5] sm:$0xff] %v615_v63  ;;  %v624_v4 = vpack.c.bf16 %v2188_v41, %v2188_v41 }
 0x13e   :  { %658 = vmatmul.mubr.bf16.vlgmr.msra.gmra.mxu0 %v624_v4  ;;  %699 = vmatmul.mubr.bf16.vlgmr.msra.gmra.mxu1 %v624_v4 }
 0x13f   :  { %751 = vmatpush1.bf16.msra.mxu0 %v1834_v12  ;;  %792 = vmatpush1.bf16.msra.mxu1 %v1839_v13 }
 0x140   :  { %752 = vmatprep.subr.bf16.mxu0 %v1845_v14  ;;  %793 = vmatprep.subr.bf16.mxu1 %v1852_v15 }
 0x141   :  { %782 = vmatprep.mubr.bf16.mxu0 %v2689_v50  ;;  %823 = vmatprep.mubr.bf16.mxu1 %v2689_v50 }
 0x143   :  { %753 = vmatpush1.bf16.msra.mxu0 %v1859_v16  ;;  %794 = vmatpush1.bf16.msra.mxu1 %v1864_v17 }
 0x144   :  { %754 = vmatprep.subr.bf16.mxu0 %v1879_v20  ;;  %795 = vmatprep.subr.bf16.mxu1 %v1885_v22 }
 0x147   :  { %755 = vmatpush1.bf16.msra.mxu0 %v1890_v23  ;;  %796 = vmatpush1.bf16.msra.mxu1 %v1896_v24 }
 0x148   :  { %756 = vmatprep.subr.bf16.mxu0 %v1903_v25  ;;  %797 = vmatprep.subr.bf16.mxu1 %v1909_v26 }
 0x14b   :  { %757 = vmatpush1.bf16.msra.mxu0 %v1914_v27  ;;  %798 = vmatpush1.bf16.msra.mxu1 %v1931_v30 }
 0x14c   :  { %758 = vmatprep.subr.bf16.mxu0 %v1936_v31  ;;  %799 = vmatprep.subr.bf16.mxu1 %v1943_v32 }
 0x14f   :  { %759 = vmatpush1.bf16.msra.mxu0 %v1949_v34  ;;  %800 = vmatpush1.bf16.msra.mxu1 %v1954_v35 }
 0x150   :  { %760 = vmatprep.subr.bf16.mxu0 %v1961_v36  ;;  %801 = vmatprep.subr.bf16.mxu1 %v1967_v37 }
 0x153   :  { %761 = vmatpush1.bf16.msra.mxu0 %v1974_v38  ;;  %802 = vmatpush1.bf16.msra.mxu1 %v1979_v39 }
 0x154   :  { %762 = vmatprep.subr.bf16.mxu0 %v1994_v42  ;;  %803 = vmatprep.subr.bf16.mxu1 %v2001_v43 }
 0x157   :  { %763 = vmatpush1.bf16.msra.mxu0 %v2007_v45  ;;  %804 = vmatpush1.bf16.msra.mxu1 %v2014_v46 }
 0x158   :  { %764 = vmatprep.subr.bf16.mxu0 %v2019_v47  ;;  %805 = vmatprep.subr.bf16.mxu1 %v2025_v48 }
 0x15b   :  { %765 = vmatpush1.bf16.msra.mxu0 %v2033_v49  ;;  %806 = vmatpush1.bf16.msra.mxu1 %v2043_v51 }
 0x15c   :  { %875 = vmatprep.subr.bf16.mxu0 %v1824_v10  ;;  %916 = vmatprep.subr.bf16.mxu1 %v1829_v11 }
 0x1fe   :  { %v659_v6 = vpop.f32.mrf.mxu0  ;;  %v700_v57 = vpop.f32.mrf.mxu1 }
 0x1ff   :  { %v707_v62 = vadd.f32 %v659_v6, %v2108_v7  ;;  %v709_v3 = vadd.f32 %v700_v57, %v2111_v8 }
 0x200   :  { %v661_v56 = vpop.f32.mrf.mxu0  ;;  %v702_v58 = vpop.f32.mrf.mxu1 }
 0x201   :  { %v711_v9 = vmul.f32 0.5, %v707_v62  ;;  %v708_v60 = vadd.f32 %v661_v56, %v2113_v19  ;;  %v710_v2 = vadd.f32 %v702_v58, %v2116_v21  ;;  %v731_v62 = vstv %s1542_s0 }
 0x202   :  { %v663_v61 = vpop.f32.mrf.mxu0  ;;  %v704_v29 = vpop.f32.mrf.mxu1  ;;  %vm732_vm2 = vcmp.lt.s32.totalorder %v2087_v54, %v731_v62 }
 0x203   :  { %1624 = vtanh.f32 %v711_v9  ;;  %v715_v5 = vmul.f32 0.5, %v708_v60  ;;  %v720_v53 = vmul.f32 0.5, %v710_v2 }
 0x204   :  { %v664_v18 = vpop.f32.mrf.mxu0  ;;  %v705_v59 = vpop.f32.mrf.mxu1 }
 0x205   :  { %1626 = vtanh.f32 %v715_v5 }
 0x206   :  { %1628 = vtanh.f32 %v709_v3 }
 0x207   :  { %1630 = vtanh.f32 %v720_v53 }
 0x210   :  { %v1625_v7 = vpop.eup %1624 }
 0x211   :  { %v713_v44 = vmul.f32 0.5, %v1625_v7 }
 0x212   :  { %v1627_v1 = vpop.eup %1626 }
 0x213   :  { %v714_v28 = vadd.f32 0.5, %v713_v44  ;;  %v717_v63 = vmul.f32 0.5, %v1627_v1  ;;  %v1629_v19 = vpop.eup %1628 }
 0x214   :  { %v1631_v56 = vpop.eup %1630 }
 0x215   :  { %v718_v4 = vadd.f32 0.5, %v717_v63  ;;  %v725_v6 = vmul.f32 %v1629_v19, %v714_v28  ;;  %v722_v58 = vmul.f32 0.5, %v1631_v56 }
 0x217   :  { %v724_v8 = vmul.f32 %v718_v4, %v2185_v0  ;;  %v723_v9 = vadd.f32 0.5, %v722_v58 }
 0x219   :  { %v726_v57 = vadd.f32 %v725_v6, %v724_v8  ;;  %v2690_v6 = vld [vmem:[#allocation8_spill] sm:$0xff] }
 0x21b   :  { %1632 = vtanh.f32 %v726_v57  ;;  %v2236_v21 = vsel %vm732_vm2, %v726_v57, %v2185_v0 }
 0x228   :  { %v1633_v60 = vpop.eup %1632 }
 0x229   :  { %v728_v61 = vmul.f32 %v1633_v60, %v723_v9 }
 0x22b   :  { %v2239_v29 = vsel %vm732_vm2, %v728_v61, %v2188_v41  ;;  %v739_v3 = vsel %vm732_vm2, %v728_v61, 0.0 }
 0x22c   :  { %1543 = vst [vmem:[%s2666_s5 + $0x8] sm:$0xff] %v739_v3  ;;  %v749_v5 = vpack.c.bf16 %v2239_v29, %v2239_v29  ;;  %v856_v3 = vstv %s1544_s26 }
 0x22d   :  { %vm857_vm3 = vcmp.lt.s32.totalorder %v2087_v54, %v856_v3 }
 0x22e   :  { %783 = vmatmul.mubr.bf16.vlgmr.msra.gmra.mxu0 %v749_v5  ;;  %824 = vmatmul.mubr.bf16.vlgmr.msra.gmra.mxu1 %v749_v5 }
 0x22f   :  { %876 = vmatpush1.bf16.msra.mxu0 %v1834_v12  ;;  %917 = vmatpush1.bf16.msra.mxu1 %v1839_v13 }
 0x230   :  { %877 = vmatprep.subr.bf16.mxu0 %v1845_v14  ;;  %918 = vmatprep.subr.bf16.mxu1 %v1852_v15 }
 0x231   :  { %907 = vmatprep.mubr.bf16.mxu0 %v2689_v50  ;;  %948 = vmatprep.mubr.bf16.mxu1 %v2689_v50 }
 0x233   :  { %878 = vmatpush1.bf16.msra.mxu0 %v1859_v16  ;;  %919 = vmatpush1.bf16.msra.mxu1 %v1864_v17 }
 0x234   :  { %879 = vmatprep.subr.bf16.mxu0 %v1879_v20  ;;  %920 = vmatprep.subr.bf16.mxu1 %v1885_v22 }
 0x237   :  { %880 = vmatpush1.bf16.msra.mxu0 %v1890_v23  ;;  %921 = vmatpush1.bf16.msra.mxu1 %v1896_v24 }
 0x238   :  { %881 = vmatprep.subr.bf16.mxu0 %v1903_v25  ;;  %922 = vmatprep.subr.bf16.mxu1 %v1909_v26 }
 0x23b   :  { %882 = vmatpush1.bf16.msra.mxu0 %v1914_v27  ;;  %923 = vmatpush1.bf16.msra.mxu1 %v1931_v30 }
 0x23c   :  { %883 = vmatprep.subr.bf16.mxu0 %v1936_v31  ;;  %924 = vmatprep.subr.bf16.mxu1 %v1943_v32 }
 0x23f   :  { %884 = vmatpush1.bf16.msra.mxu0 %v1949_v34  ;;  %925 = vmatpush1.bf16.msra.mxu1 %v1954_v35 }
 0x240   :  { %885 = vmatprep.subr.bf16.mxu0 %v1961_v36  ;;  %926 = vmatprep.subr.bf16.mxu1 %v1967_v37 }
 0x243   :  { %886 = vmatpush1.bf16.msra.mxu0 %v1974_v38  ;;  %927 = vmatpush1.bf16.msra.mxu1 %v1979_v39 }
 0x244   :  { %887 = vmatprep.subr.bf16.mxu0 %v1994_v42  ;;  %928 = vmatprep.subr.bf16.mxu1 %v2001_v43 }
 0x247   :  { %888 = vmatpush1.bf16.msra.mxu0 %v2007_v45  ;;  %929 = vmatpush1.bf16.msra.mxu1 %v2014_v46 }
 0x248   :  { %889 = vmatprep.subr.bf16.mxu0 %v2019_v47  ;;  %930 = vmatprep.subr.bf16.mxu1 %v2025_v48 }
 0x24b   :  { %890 = vmatpush1.bf16.msra.mxu0 %v2033_v49  ;;  %931 = vmatpush1.bf16.msra.mxu1 %v2043_v51 }
 0x24c   :  { %1000 = vmatprep.subr.bf16.mxu0 %v1824_v10  ;;  %1041 = vmatprep.subr.bf16.mxu1 %v1829_v11 }
 0x2ee   :  { %v784_v0 = vpop.f32.mrf.mxu0  ;;  %v825_v41 = vpop.f32.mrf.mxu1 }
 0x2ef   :  { %v832_v18 = vadd.f32 %v784_v0, %v2118_v33  ;;  %v834_v28 = vadd.f32 %v825_v41, %v2121_v40 }
 0x2f0   :  { %v786_v59 = vpop.f32.mrf.mxu0  ;;  %v827_v2 = vpop.f32.mrf.mxu1 }
 0x2f1   :  { %v836_v53 = vmul.f32 0.5, %v832_v18  ;;  %v833_v7 = vadd.f32 %v786_v59, %v2123_v52  ;;  %v835_v62 = vadd.f32 %v827_v2, %v2690_v6 }
 0x2f2   :  { %v788_v44 = vpop.f32.mrf.mxu0  ;;  %v829_v1 = vpop.f32.mrf.mxu1 }
 0x2f3   :  { %1634 = vtanh.f32 %v836_v53  ;;  %v840_v63 = vmul.f32 0.5, %v833_v7  ;;  %v845_v8 = vmul.f32 0.5, %v835_v62 }
 0x2f4   :  { %v789_v19 = vpop.f32.mrf.mxu0  ;;  %v830_v4 = vpop.f32.mrf.mxu1 }
 0x2f5   :  { %1636 = vtanh.f32 %v840_v63  ;;  %v2692_v4 = vld [vmem:[#allocation11_spill] sm:$0xff] }
 0x2f6   :  { %1638 = vtanh.f32 %v834_v28 }
 0x2f7   :  { %1640 = vtanh.f32 %v845_v8 }
 0x300   :  { %v1635_v33 = vpop.eup %1634 }
 0x301   :  { %v838_v57 = vmul.f32 0.5, %v1635_v33  ;;  %v2693_v33 = vld [vmem:[#allocation10_spill] sm:$0xff] }
 0x302   :  { %v1637_v56 = vpop.eup %1636 }
 0x303   :  { %v839_v58 = vadd.f32 0.5, %v838_v57  ;;  %v842_v9 = vmul.f32 0.5, %v1637_v56  ;;  %v1639_v52 = vpop.eup %1638 }
 0x304   :  { %v1641_v41 = vpop.eup %1640 }
 0x305   :  { %v843_v60 = vadd.f32 0.5, %v842_v9  ;;  %v850_v61 = vmul.f32 %v1639_v52, %v839_v58  ;;  %v847_v18 = vmul.f32 0.5, %v1641_v41 }
 0x307   :  { %v849_v40 = vmul.f32 %v843_v60, %v2236_v21  ;;  %v848_v59 = vadd.f32 0.5, %v847_v18 }
 0x309   :  { %v851_v5 = vadd.f32 %v850_v61, %v849_v40 }
 0x30b   :  { %1642 = vtanh.f32 %v851_v5  ;;  %v2287_v0 = vsel %vm857_vm3, %v851_v5, %v2236_v21  ;;  %v2691_v21 = vld [vmem:[#allocation9_spill] sm:$0xff] }
 0x318   :  { %v1643_v2 = vpop.eup %1642 }
 0x319   :  { %v853_v53 = vmul.f32 %v1643_v2, %v848_v59  ;;  %v981_v2 = vstv %s1546_s28 }
 0x31a   :  { %vm982_vm4 = vcmp.lt.s32.totalorder %v2087_v54, %v981_v2  ;;  %v2462_v2 = vld [vmem:[%s2665_s4 + $0xa0] ss:$16 sps:$4 sm:$0xff]  }
 0x31b   :  { %v2290_v7 = vsel %vm857_vm3, %v853_v53, %v2239_v29  ;;  %v864_v44 = vsel %vm857_vm3, %v853_v53, 0.0 }
 0x31c   :  { %1545 = vst [vmem:[%s2666_s5 + $0x10] sm:$0xff] %v864_v44  ;;  %v874_v1 = vpack.c.bf16 %v2290_v7, %v2290_v7 }
 0x31e   :  { %908 = vmatmul.mubr.bf16.vlgmr.msra.gmra.mxu0 %v874_v1  ;;  %949 = vmatmul.mubr.bf16.vlgmr.msra.gmra.mxu1 %v874_v1 }
 0x31f   :  { %1001 = vmatpush1.bf16.msra.mxu0 %v1834_v12  ;;  %1042 = vmatpush1.bf16.msra.mxu1 %v1839_v13 }
 0x320   :  { %1002 = vmatprep.subr.bf16.mxu0 %v1845_v14  ;;  %1043 = vmatprep.subr.bf16.mxu1 %v1852_v15 }
 0x321   :  { %1032 = vmatprep.mubr.bf16.mxu0 %v2689_v50  ;;  %1073 = vmatprep.mubr.bf16.mxu1 %v2689_v50 }
 0x323   :  { %1003 = vmatpush1.bf16.msra.mxu0 %v1859_v16  ;;  %1044 = vmatpush1.bf16.msra.mxu1 %v1864_v17 }
 0x324   :  { %1004 = vmatprep.subr.bf16.mxu0 %v1879_v20  ;;  %1045 = vmatprep.subr.bf16.mxu1 %v1885_v22 }
 0x327   :  { %1005 = vmatpush1.bf16.msra.mxu0 %v1890_v23  ;;  %1046 = vmatpush1.bf16.msra.mxu1 %v1896_v24 }
 0x328   :  { %1006 = vmatprep.subr.bf16.mxu0 %v1903_v25  ;;  %1047 = vmatprep.subr.bf16.mxu1 %v1909_v26 }
 0x32b   :  { %1007 = vmatpush1.bf16.msra.mxu0 %v1914_v27  ;;  %1048 = vmatpush1.bf16.msra.mxu1 %v1931_v30 }
 0x32c   :  { %1008 = vmatprep.subr.bf16.mxu0 %v1936_v31  ;;  %1049 = vmatprep.subr.bf16.mxu1 %v1943_v32 }
 0x32f   :  { %1009 = vmatpush1.bf16.msra.mxu0 %v1949_v34  ;;  %1050 = vmatpush1.bf16.msra.mxu1 %v1954_v35 }
 0x330   :  { %1010 = vmatprep.subr.bf16.mxu0 %v1961_v36  ;;  %1051 = vmatprep.subr.bf16.mxu1 %v1967_v37 }
 0x333   :  { %1011 = vmatpush1.bf16.msra.mxu0 %v1974_v38  ;;  %1052 = vmatpush1.bf16.msra.mxu1 %v1979_v39 }
 0x334   :  { %1012 = vmatprep.subr.bf16.mxu0 %v1994_v42  ;;  %1053 = vmatprep.subr.bf16.mxu1 %v2001_v43 }
 0x337   :  { %1013 = vmatpush1.bf16.msra.mxu0 %v2007_v45  ;;  %1054 = vmatpush1.bf16.msra.mxu1 %v2014_v46 }
 0x338   :  { %1014 = vmatprep.subr.bf16.mxu0 %v2019_v47  ;;  %1055 = vmatprep.subr.bf16.mxu1 %v2025_v48 }
 0x33b   :  { %1015 = vmatpush1.bf16.msra.mxu0 %v2033_v49  ;;  %1056 = vmatpush1.bf16.msra.mxu1 %v2043_v51 }
 0x33c   :  { %1125 = vmatprep.subr.bf16.mxu0 %v1824_v10  ;;  %1166 = vmatprep.subr.bf16.mxu1 %v1829_v11  ;;  %v2694_v10 = vld [vmem:[#allocation12_spill] sm:$0xff] }
 0x3de   :  { %v909_v12 = vpop.f32.mrf.mxu0  ;;  %v950_v13 = vpop.f32.mrf.mxu1 }
 0x3df   :  { %v957_v29 = vadd.f32 %v909_v12, %v2691_v21  ;;  %v959_v57 = vadd.f32 %v950_v13, %v2693_v33 }
 0x3e0   :  { %v911_v28 = vpop.f32.mrf.mxu0  ;;  %v952_v63 = vpop.f32.mrf.mxu1 }
 0x3e1   :  { %v961_v19 = vmul.f32 0.5, %v957_v29  ;;  %v958_v6 = vadd.f32 %v911_v28, %v2692_v4  ;;  %v960_v11 = vadd.f32 %v952_v63, %v2694_v10 }
 0x3e2   :  { %v913_v62 = vpop.f32.mrf.mxu0  ;;  %v954_v8 = vpop.f32.mrf.mxu1 }
 0x3e3   :  { %1644 = vtanh.f32 %v961_v19  ;;  %v965_v56 = vmul.f32 0.5, %v958_v6  ;;  %v970_v52 = vmul.f32 0.5, %v960_v11  ;;  %v1106_v62 = vstv %s1548_s13 }
 0x3e4   :  { %v914_v58 = vpop.f32.mrf.mxu0  ;;  %v955_v9 = vpop.f32.mrf.mxu1  ;;  %vm1107_vm5 = vcmp.lt.s32.totalorder %v2087_v54, %v1106_v62 }
 0x3e5   :  { %1646 = vtanh.f32 %v965_v56 }
 0x3e6   :  { %1648 = vtanh.f32 %v959_v57 }
 0x3e7   :  { %1650 = vtanh.f32 %v970_v52 }
 0x3f0   :  { %v1645_v60 = vpop.eup %1644 }
 0x3f1   :  { %v963_v61 = vmul.f32 0.5, %v1645_v60 }
 0x3f2   :  { %v1647_v3 = vpop.eup %1646 }
 0x3f3   :  { %v964_v40 = vadd.f32 0.5, %v963_v61  ;;  %v967_v5 = vmul.f32 0.5, %v1647_v3  ;;  %v1649_v41 = vpop.eup %1648  ;;  %v2424_v3 = vld [vmem:[%s2665_s4 + $0xc4] ss:$16 sps:$4 sm:$0xff]  }
 0x3f4   :  { %v1651_v12 = vpop.eup %1650 }
 0x3f5   :  { %v968_v18 = vadd.f32 0.5, %v967_v5  ;;  %v975_v59 = vmul.f32 %v1649_v41, %v964_v40  ;;  %v972_v13 = vmul.f32 0.5, %v1651_v12  ;;  %v2430_v40 = vld [vmem:[%s2665_s4 + $0xcc] ss:$16 sps:$4 sm:$0xff]   ;;  %v2438_v5 = vld [vmem:[%s2665_s4 + $0xc0] ss:$16 sps:$4 sm:$0xff]  }
 0x3f6   :  { %v2444_v41 = vld [vmem:[%s2665_s4 + $0xc8] ss:$16 sps:$4 sm:$0xff]   ;;  %v2486_v12 = vld [vmem:[%s2665_s4 + $0x80] ss:$16 sps:$4 sm:$0xff]  }
 0x3f7   :  { %v974_v53 = vmul.f32 %v968_v18, %v2287_v0  ;;  %v973_v21 = vadd.f32 0.5, %v972_v13  ;;  %v2450_v18 = vld [vmem:[%s2665_s4 + $0xa4] ss:$16 sps:$4 sm:$0xff]   ;;  %v2492_v13 = vld [vmem:[%s2665_s4 + $0x88] ss:$16 sps:$4 sm:$0xff]  }
 0x3f9   :  { %v976_v44 = vadd.f32 %v975_v59, %v974_v53  ;;  %v2456_v59 = vld [vmem:[%s2665_s4 + $0xac] ss:$16 sps:$4 sm:$0xff]   ;;  %v2468_v53 = vld [vmem:[%s2665_s4 + $0xa8] ss:$16 sps:$4 sm:$0xff]  }
 0x3fb   :  { %1652 = vtanh.f32 %v976_v44  ;;  %v2338_v1 = vsel %vm982_vm4, %v976_v44, %v2287_v0  ;;  %v2351_v0 = vld [vmem:[%s2665_s4 + $0xe0] ss:$16 sps:$4 sm:$0xff]   ;;  %v2474_v44 = vld [vmem:[%s2665_s4 + $0x84] ss:$16 sps:$4 sm:$0xff]  }
 0x408   :  { %v1653_v29 = vpop.eup %1652 }
 0x409   :  { %v978_v28 = vmul.f32 %v1653_v29, %v973_v21  ;;  %v2498_v21 = vld [vmem:[%s2665_s4 + $0x64] ss:$16 sps:$4 sm:$0xff]   ;;  %v2504_v29 = vld [vmem:[%s2665_s4 + $0x6c] ss:$16 sps:$4 sm:$0xff]  }
 0x40b   :  { %v2341_v63 = vsel %vm982_vm4, %v978_v28, %v2290_v7  ;;  %v989_v19 = vsel %vm982_vm4, %v978_v28, 0.0  ;;  %v2357_v7 = vld [vmem:[%s2665_s4 + $0xe8] ss:$16 sps:$4 sm:$0xff]   ;;  %v2510_v28 = vld [vmem:[%s2665_s4 + $0x60] ss:$16 sps:$4 sm:$0xff]  }
 0x40c   :  { %1547 = vst [vmem:[%s2666_s5 + $0x18] sm:$0xff] %v989_v19  ;;  %v999_v4 = vpack.c.bf16 %v2341_v63, %v2341_v63  ;;  %v2522_v19 = vld [vmem:[%s2665_s4 + $0x44] ss:$16 sps:$4 sm:$0xff]  }
 0x40e   :  { %1033 = vmatmul.mubr.bf16.vlgmr.msra.gmra.mxu0 %v999_v4  ;;  %1074 = vmatmul.mubr.bf16.vlgmr.msra.gmra.mxu1 %v999_v4  ;;  %v2528_v4 = vld [vmem:[%s2665_s4 + $0x4c] ss:$16 sps:$4 sm:$0xff]  }
 0x40f   :  { %1126 = vmatpush1.bf16.msra.mxu0 %v2351_v0  ;;  %1167 = vmatpush1.bf16.msra.mxu1 %v2357_v7 }
 0x410   :  { %1127 = vmatprep.subr.bf16.mxu0 %v1845_v14  ;;  %1168 = vmatprep.subr.bf16.mxu1 %v1852_v15  ;;  %v2393_v14 = vld [vmem:[%s2665_s4 + $0xe4] ss:$16 sps:$4 sm:$0xff]   ;;  %v2399_v15 = vld [vmem:[%s2665_s4 + $0xec] ss:$16 sps:$4 sm:$0xff]  }
 0x411   :  { %1157 = vmatprep.mubr.bf16.mxu0 %v2689_v50  ;;  %1198 = vmatprep.mubr.bf16.mxu1 %v2689_v50 }
 0x413   :  { %1128 = vmatpush1.bf16.msra.mxu0 %v1859_v16  ;;  %1169 = vmatpush1.bf16.msra.mxu1 %v1864_v17 }
 0x414   :  { %1129 = vmatprep.subr.bf16.mxu0 %v1879_v20  ;;  %1170 = vmatprep.subr.bf16.mxu1 %v1885_v22  ;;  %v2695_v20 = vld [vmem:[#allocation13_spill] sm:$0xff] }
 0x417   :  { %1130 = vmatpush1.bf16.msra.mxu0 %v1890_v23  ;;  %1171 = vmatpush1.bf16.msra.mxu1 %v1896_v24 }
 0x418   :  { %1131 = vmatprep.subr.bf16.mxu0 %v1903_v25  ;;  %1172 = vmatprep.subr.bf16.mxu1 %v1909_v26  ;;  %v2696_v26 = vld [vmem:[#allocation15_spill] sm:$0xff] }
 0x41b   :  { %1132 = vmatpush1.bf16.msra.mxu0 %v1914_v27  ;;  %1173 = vmatpush1.bf16.msra.mxu1 %v1931_v30 }
 0x41c   :  { %1133 = vmatprep.subr.bf16.mxu0 %v1936_v31  ;;  %1174 = vmatprep.subr.bf16.mxu1 %v1943_v32  ;;  %v2697_v32 = vld [vmem:[#allocation14_spill] sm:$0xff] }
 0x41f   :  { %1134 = vmatpush1.bf16.msra.mxu0 %v1949_v34  ;;  %1175 = vmatpush1.bf16.msra.mxu1 %v1954_v35 }
 0x420   :  { %1135 = vmatprep.subr.bf16.mxu0 %v1961_v36  ;;  %1176 = vmatprep.subr.bf16.mxu1 %v1967_v37 }
 0x423   :  { %1136 = vmatpush1.bf16.msra.mxu0 %v1974_v38  ;;  %1177 = vmatpush1.bf16.msra.mxu1 %v1979_v39  ;;  %v2698_v38 = vld [vmem:[#allocation16_spill] sm:$0xff] }
 0x424   :  { %1137 = vmatprep.subr.bf16.mxu0 %v1994_v42  ;;  %1178 = vmatprep.subr.bf16.mxu1 %v2001_v43 }
 0x427   :  { %1138 = vmatpush1.bf16.msra.mxu0 %v2007_v45  ;;  %1179 = vmatpush1.bf16.msra.mxu1 %v2014_v46 }
 0x428   :  { %1139 = vmatprep.subr.bf16.mxu0 %v2019_v47  ;;  %1180 = vmatprep.subr.bf16.mxu1 %v2025_v48 }
 0x42b   :  { %1140 = vmatpush1.bf16.msra.mxu0 %v2033_v49  ;;  %1181 = vmatpush1.bf16.msra.mxu1 %v2043_v51 }
 0x42c   :  { %1250 = vmatprep.subr.bf16.mxu0 %v2393_v14  ;;  %1291 = vmatprep.subr.bf16.mxu1 %v2399_v15 }
 0x4ce   :  { %v1034_v16 = vpop.f32.mrf.mxu0  ;;  %v1075_v17 = vpop.f32.mrf.mxu1 }
 0x4cf   :  { %v1082_v22 = vadd.f32 %v1034_v16, %v2695_v20  ;;  %v1084_v34 = vadd.f32 %v1075_v17, %v2697_v32  ;;  %v2534_v16 = vld [vmem:[%s2665_s4 + $0x40] ss:$16 sps:$4 sm:$0xff]   ;;  %v2540_v17 = vld [vmem:[%s2665_s4 + $0x48] ss:$16 sps:$4 sm:$0xff]   ;;  %v2546_v20 = vld [vmem:[%s2665_s4 + $0x24] ss:$16 sps:$4 sm:$0xff]  }
 0x4d0   :  { %v1036_v23 = vpop.f32.mrf.mxu0  ;;  %v1077_v24 = vpop.f32.mrf.mxu1 }
 0x4d1   :  { %v1086_v25 = vmul.f32 0.5, %v1082_v22  ;;  %v1083_v27 = vadd.f32 %v1036_v23, %v2696_v26  ;;  %v1085_v39 = vadd.f32 %v1077_v24, %v2698_v38  ;;  %v2552_v22 = vld [vmem:[%s2665_s4 + $0x2c] ss:$16 sps:$4 sm:$0xff]   ;;  %v2558_v23 = vld [vmem:[%s2665_s4 + $0x20] ss:$16 sps:$4 sm:$0xff]  }
 0x4d2   :  { %v1038_v30 = vpop.f32.mrf.mxu0  ;;  %v1079_v31 = vpop.f32.mrf.mxu1  ;;  %v2564_v24 = vld [vmem:[%s2665_s4 + $0x28] ss:$16 sps:$4 sm:$0xff]   ;;  %v2576_v26 = vld [vmem:[%s2665_s4 + $0xc] ss:$16 sps:$4 sm:$0xff]  }
 0x4d3   :  { %1654 = vtanh.f32 %v1086_v25  ;;  %v1090_v35 = vmul.f32 0.5, %v1083_v27  ;;  %v1095_v42 = vmul.f32 0.5, %v1085_v39  ;;  %v2570_v25 = vld [vmem:[%s2665_s4 + $0x4] ss:$16 sps:$4 sm:$0xff]   ;;  %v2582_v27 = vld [vmem:[%s2665_s4] ss:$16 sps:$4 sm:$0xff]  }
 0x4d4   :  { %v1039_v36 = vpop.f32.mrf.mxu0  ;;  %v1080_v37 = vpop.f32.mrf.mxu1  ;;  %v2588_v30 = vld [vmem:[%s2665_s4 + $0x8] ss:$16 sps:$4 sm:$0xff]  }
 0x4d5   :  { %1656 = vtanh.f32 %v1090_v35  ;;  %v2700_v39 = vld [vmem:[#allocation19_spill] sm:$0xff] }
 0x4d6   :  { %1658 = vtanh.f32 %v1084_v34  ;;  %v2699_v34 = vld [vmem:[#allocation17_spill] sm:$0xff] }
 0x4d7   :  { %1660 = vtanh.f32 %v1095_v42 }
 0x4e0   :  { %v1655_v43 = vpop.eup %1654 }
 0x4e1   :  { %v1088_v45 = vmul.f32 0.5, %v1655_v43 }
 0x4e2   :  { %v1657_v46 = vpop.eup %1656 }
 0x4e3   :  { %v1089_v47 = vadd.f32 0.5, %v1088_v45  ;;  %v1092_v48 = vmul.f32 0.5, %v1657_v46  ;;  %v1659_v49 = vpop.eup %1658  ;;  %v2701_v46 = vld [vmem:[#allocation18_spill] sm:$0xff] }
 0x4e4   :  { %v1661_v56 = vpop.eup %1660 }
 0x4e5   :  { %v1093_v51 = vadd.f32 0.5, %v1092_v48  ;;  %v1100_v6 = vmul.f32 %v1659_v49, %v1089_v47  ;;  %v1097_v58 = vmul.f32 0.5, %v1661_v56 }
 0x4e7   :  { %v1099_v8 = vmul.f32 %v1093_v51, %v2338_v1  ;;  %v1098_v9 = vadd.f32 0.5, %v1097_v58 }
 0x4e9   :  { %v1101_v33 = vadd.f32 %v1100_v6, %v1099_v8 }
 0x4eb   :  { %1662 = vtanh.f32 %v1101_v33  ;;  %v2409_v57 = vsel %vm1107_vm5, %v1101_v33, %v2338_v1  ;;  %v2480_v1 = vld [vmem:[%s2665_s4 + $0x8c] ss:$16 sps:$4 sm:$0xff]  }
 0x4f8   :  { %v1663_v10 = vpop.eup %1662 }
 0x4f9   :  { %v1103_v11 = vmul.f32 %v1663_v10, %v1098_v9 }
 0x4fb   :  { %v2412_v52 = vsel %vm1107_vm5, %v1103_v11, %v2341_v63  ;;  %v1114_v60 = vsel %vm1107_vm5, %v1103_v11, 0.0  ;;  %v2516_v63 = vld [vmem:[%s2665_s4 + $0x68] ss:$16 sps:$4 sm:$0xff]   ;;  %s1550_s4 = sld [smem:[#allocation6 + $0x5]] }
 0x4fc   :  { %1549 = vst [vmem:[%s2666_s5 + $0x20] sm:$0xff] %v1114_v60  ;;  %v1124_v61 = vpack.c.bf16 %v2412_v52, %v2412_v52 }
 0x4fe   :  { %1158 = vmatmul.mubr.bf16.vlgmr.msra.gmra.mxu0 %v1124_v61  ;;  %1199 = vmatmul.mubr.bf16.vlgmr.msra.gmra.mxu1 %v1124_v61 }
 0x4ff   :  { %1251 = vmatpush1.bf16.msra.mxu0 %v2351_v0  ;;  %1292 = vmatpush1.bf16.msra.mxu1 %v2357_v7 }
 0x500   :  { %1252 = vmatprep.subr.bf16.mxu0 %v2424_v3  ;;  %1293 = vmatprep.subr.bf16.mxu1 %v2430_v40 }
 0x501   :  { %1282 = vmatprep.mubr.bf16.mxu0 %v2689_v50  ;;  %1323 = vmatprep.mubr.bf16.mxu1 %v2689_v50  ;;  %v1231_v60 = vstv %s1550_s4 }
 0x502   :  { %vm1232_vm6 = vcmp.lt.s32.totalorder %v2087_v54, %v1231_v60  ;;  %v2709_v60 = vld [vmem:[#allocation26_spill] sm:$0xff] }
 0x503   :  { %1253 = vmatpush1.bf16.msra.mxu0 %v2438_v5  ;;  %1294 = vmatpush1.bf16.msra.mxu1 %v2444_v41 }
 0x504   :  { %1254 = vmatprep.subr.bf16.mxu0 %v2450_v18  ;;  %1295 = vmatprep.subr.bf16.mxu1 %v2456_v59 }
 0x507   :  { %1255 = vmatpush1.bf16.msra.mxu0 %v2462_v2  ;;  %1296 = vmatpush1.bf16.msra.mxu1 %v2468_v53 }
 0x508   :  { %1256 = vmatprep.subr.bf16.mxu0 %v2474_v44  ;;  %1297 = vmatprep.subr.bf16.mxu1 %v2480_v1 }
 0x50b   :  { %1257 = vmatpush1.bf16.msra.mxu0 %v2486_v12  ;;  %1298 = vmatpush1.bf16.msra.mxu1 %v2492_v13 }
 0x50c   :  { %1258 = vmatprep.subr.bf16.mxu0 %v2498_v21  ;;  %1299 = vmatprep.subr.bf16.mxu1 %v2504_v29 }
 0x50f   :  { %1259 = vmatpush1.bf16.msra.mxu0 %v2510_v28  ;;  %1300 = vmatpush1.bf16.msra.mxu1 %v2516_v63 }
 0x510   :  { %1260 = vmatprep.subr.bf16.mxu0 %v2522_v19  ;;  %1301 = vmatprep.subr.bf16.mxu1 %v2528_v4 }
 0x513   :  { %1261 = vmatpush1.bf16.msra.mxu0 %v2534_v16  ;;  %1302 = vmatpush1.bf16.msra.mxu1 %v2540_v17 }
 0x514   :  { %1262 = vmatprep.subr.bf16.mxu0 %v2546_v20  ;;  %1303 = vmatprep.subr.bf16.mxu1 %v2552_v22 }
 0x517   :  { %1263 = vmatpush1.bf16.msra.mxu0 %v2558_v23  ;;  %1304 = vmatpush1.bf16.msra.mxu1 %v2564_v24 }
 0x518   :  { %1264 = vmatprep.subr.bf16.mxu0 %v2570_v25  ;;  %1305 = vmatprep.subr.bf16.mxu1 %v2576_v26 }
 0x51b   :  { %1265 = vmatpush1.bf16.msra.mxu0 %v2582_v27  ;;  %1306 = vmatpush1.bf16.msra.mxu1 %v2588_v30 }
 0x51c   :  { %1375 = vmatprep.subr.bf16.mxu0 %v2393_v14  ;;  %1416 = vmatprep.subr.bf16.mxu1 %v2399_v15  ;;  %v2702_v14 = vld [vmem:[#allocation20_spill] sm:$0xff] }
 0x5be   :  { %v1159_v31 = vpop.f32.mrf.mxu0  ;;  %v1200_v32 = vpop.f32.mrf.mxu1 }
 0x5bf   :  { %v1207_v35 = vadd.f32 %v1159_v31, %v2699_v34  ;;  %v1209_v47 = vadd.f32 %v1200_v32, %v2701_v46 }
 0x5c0   :  { %v1161_v36 = vpop.f32.mrf.mxu0  ;;  %v1202_v37 = vpop.f32.mrf.mxu1 }
 0x5c1   :  { %v1211_v38 = vmul.f32 0.5, %v1207_v35  ;;  %v1208_v42 = vadd.f32 %v1161_v36, %v2700_v39  ;;  %v1210_v15 = vadd.f32 %v1202_v37, %v2702_v14 }
 0x5c2   :  { %v1163_v43 = vpop.f32.mrf.mxu0  ;;  %v1204_v45 = vpop.f32.mrf.mxu1 }
 0x5c3   :  { %1664 = vtanh.f32 %v1211_v38  ;;  %v1215_v48 = vmul.f32 0.5, %v1208_v42  ;;  %v1220_v6 = vmul.f32 0.5, %v1210_v15 }
 0x5c4   :  { %v1164_v49 = vpop.f32.mrf.mxu0  ;;  %v1205_v51 = vpop.f32.mrf.mxu1 }
 0x5c5   :  { %1666 = vtanh.f32 %v1215_v48 }
 0x5c6   :  { %1668 = vtanh.f32 %v1209_v47 }
 0x5c7   :  { %1670 = vtanh.f32 %v1220_v6  ;;  %v2707_v6 = vld [vmem:[#allocation25_spill] sm:$0xff] }
 0x5d0   :  { %v1665_v62 = vpop.eup %1664 }
 0x5d1   :  { %v1213_v8 = vmul.f32 0.5, %v1665_v62 }
 0x5d2   :  { %v1667_v33 = vpop.eup %1666 }
 0x5d3   :  { %v1214_v56 = vadd.f32 0.5, %v1213_v8  ;;  %v1217_v58 = vmul.f32 0.5, %v1667_v33  ;;  %v1669_v9 = vpop.eup %1668 }
 0x5d4   :  { %v1671_v34 = vpop.eup %1670 }
 0x5d5   :  { %v1218_v10 = vadd.f32 0.5, %v1217_v58  ;;  %v1225_v11 = vmul.f32 %v1669_v9, %v1214_v56  ;;  %v1222_v35 = vmul.f32 0.5, %v1671_v34  ;;  %v2708_v58 = vld [vmem:[#allocation27_spill] sm:$0xff] }
 0x5d7   :  { %v1224_v61 = vmul.f32 %v1218_v10, %v2409_v57  ;;  %v1223_v36 = vadd.f32 0.5, %v1222_v35 }
 0x5d9   :  { %v1226_v31 = vadd.f32 %v1225_v11, %v1224_v61 }
 0x5db   :  { %1672 = vtanh.f32 %v1226_v31  ;;  %v2600_v32 = vsel %vm1232_vm6, %v1226_v31, %v2409_v57 }
 0x5e8   :  { %v1673_v37 = vpop.eup %1672 }
 0x5e9   :  { %v1228_v38 = vmul.f32 %v1673_v37, %v1223_v36 }
 0x5eb   :  { %v2603_v39 = vsel %vm1232_vm6, %v1228_v38, %v2412_v52  ;;  %v1239_v42 = vsel %vm1232_vm6, %v1228_v38, 0.0 }
 0x5ec   :  { %1551 = vst [vmem:[%s2666_s5 + $0x28] sm:$0xff] %v1239_v42  ;;  %v1249_v43 = vpack.c.bf16 %v2603_v39, %v2603_v39 }
 0x5ee   :  { %1283 = vmatmul.mubr.bf16.vlgmr.msra.gmra.mxu0 %v1249_v43  ;;  %1324 = vmatmul.mubr.bf16.vlgmr.msra.gmra.mxu1 %v1249_v43 }
 0x5ef   :  { %1376 = vmatpush1.bf16.msra.mxu0 %v2351_v0  ;;  %1417 = vmatpush1.bf16.msra.mxu1 %v2357_v7  ;;  %v2703_v7 = vld [vmem:[#allocation21_spill] sm:$0xff] }
 0x5f0   :  { %1377 = vmatprep.subr.bf16.mxu0 %v2424_v3  ;;  %1418 = vmatprep.subr.bf16.mxu1 %v2430_v40 }
 0x5f1   :  { %1407 = vmatprep.mubr.bf16.mxu0 %v2689_v50  ;;  %1448 = vmatprep.mubr.bf16.mxu1 %v2689_v50 }
 0x5f3   :  { %1378 = vmatpush1.bf16.msra.mxu0 %v2438_v5  ;;  %1419 = vmatpush1.bf16.msra.mxu1 %v2444_v41  ;;  %v2704_v5 = vld [vmem:[#allocation23_spill] sm:$0xff] }
 0x5f4   :  { %1379 = vmatprep.subr.bf16.mxu0 %v2450_v18  ;;  %1420 = vmatprep.subr.bf16.mxu1 %v2456_v59 }
 0x5f7   :  { %1380 = vmatpush1.bf16.msra.mxu0 %v2462_v2  ;;  %1421 = vmatpush1.bf16.msra.mxu1 %v2468_v53  ;;  %v2705_v2 = vld [vmem:[#allocation22_spill] sm:$0xff] }
 0x5f8   :  { %1381 = vmatprep.subr.bf16.mxu0 %v2474_v44  ;;  %1422 = vmatprep.subr.bf16.mxu1 %v2480_v1 }
 0x5fb   :  { %1382 = vmatpush1.bf16.msra.mxu0 %v2486_v12  ;;  %1423 = vmatpush1.bf16.msra.mxu1 %v2492_v13  ;;  %v2706_v13 = vld [vmem:[#allocation24_spill] sm:$0xff] }
 0x5fc   :  { %1383 = vmatprep.subr.bf16.mxu0 %v2498_v21  ;;  %1424 = vmatprep.subr.bf16.mxu1 %v2504_v29 }
 0x5ff   :  { %1384 = vmatpush1.bf16.msra.mxu0 %v2510_v28  ;;  %1425 = vmatpush1.bf16.msra.mxu1 %v2516_v63 }
 0x600   :  { %1385 = vmatprep.subr.bf16.mxu0 %v2522_v19  ;;  %1426 = vmatprep.subr.bf16.mxu1 %v2528_v4 }
 0x603   :  { %1386 = vmatpush1.bf16.msra.mxu0 %v2534_v16  ;;  %1427 = vmatpush1.bf16.msra.mxu1 %v2540_v17 }
 0x604   :  { %1387 = vmatprep.subr.bf16.mxu0 %v2546_v20  ;;  %1428 = vmatprep.subr.bf16.mxu1 %v2552_v22 }
 0x607   :  { %1388 = vmatpush1.bf16.msra.mxu0 %v2558_v23  ;;  %1429 = vmatpush1.bf16.msra.mxu1 %v2564_v24  ;;  %v1356_v23 = vstv %s1552_s16 }
 0x608   :  { %1389 = vmatprep.subr.bf16.mxu0 %v2570_v25  ;;  %1430 = vmatprep.subr.bf16.mxu1 %v2576_v26  ;;  %vm1357_vm7 = vcmp.lt.s32.totalorder %v2087_v54, %v1356_v23 }
 0x60b   :  { %1390 = vmatpush1.bf16.msra.mxu0 %v2582_v27  ;;  %1431 = vmatpush1.bf16.msra.mxu1 %v2588_v30 }
 0x6ae   :  { %v1284_v50 = vpop.f32.mrf.mxu0  ;;  %v1325_v0 = vpop.f32.mrf.mxu1 }
 0x6af   :  { %v1332_v57 = vadd.f32 %v1284_v50, %v2703_v7  ;;  %v1334_v53 = vadd.f32 %v1325_v0, %v2705_v2 }
 0x6b0   :  { %v1286_v52 = vpop.f32.mrf.mxu0  ;;  %v1327_v3 = vpop.f32.mrf.mxu1 }
 0x6b1   :  { %v1336_v40 = vmul.f32 0.5, %v1332_v57  ;;  %v1333_v41 = vadd.f32 %v1286_v52, %v2704_v5  ;;  %v1335_v21 = vadd.f32 %v1327_v3, %v2706_v13  ;;  %v1481_v57 = vstv %s1554_s19 }
 0x6b2   :  { %v1288_v18 = vpop.f32.mrf.mxu0  ;;  %v1329_v59 = vpop.f32.mrf.mxu1  ;;  %vm1482_vm8 = vcmp.lt.s32.totalorder %v2087_v54, %v1481_v57 }
 0x6b3   :  { %1674 = vtanh.f32 %v1336_v40  ;;  %v1340_v44 = vmul.f32 0.5, %v1333_v41  ;;  %v1345_v29 = vmul.f32 0.5, %v1335_v21 }
 0x6b4   :  { %v1289_v1 = vpop.f32.mrf.mxu0  ;;  %v1330_v12 = vpop.f32.mrf.mxu1 }
 0x6b5   :  { %1676 = vtanh.f32 %v1340_v44 }
 0x6b6   :  { %1678 = vtanh.f32 %v1334_v53 }
 0x6b7   :  { %1680 = vtanh.f32 %v1345_v29 }
 0x6c0   :  { %v1675_v28 = vpop.eup %1674 }
 0x6c1   :  { %v1338_v63 = vmul.f32 0.5, %v1675_v28 }
 0x6c2   :  { %v1677_v19 = vpop.eup %1676 }
 0x6c3   :  { %v1339_v4 = vadd.f32 0.5, %v1338_v63  ;;  %v1342_v16 = vmul.f32 0.5, %v1677_v19  ;;  %v1679_v17 = vpop.eup %1678 }
 0x6c4   :  { %v1681_v27 = vpop.eup %1680 }
 0x6c5   :  { %v1343_v20 = vadd.f32 0.5, %v1342_v16  ;;  %v1350_v22 = vmul.f32 %v1679_v17, %v1339_v4  ;;  %v1347_v30 = vmul.f32 0.5, %v1681_v27 }
 0x6c7   :  { %v1349_v24 = vmul.f32 %v1343_v20, %v2600_v32  ;;  %v1348_v45 = vadd.f32 0.5, %v1347_v30 }
 0x6c9   :  { %v1351_v25 = vadd.f32 %v1350_v22, %v1349_v24 }
 0x6cb   :  { %1682 = vtanh.f32 %v1351_v25  ;;  %v1360_v26 = vsel %vm1357_vm7, %v1351_v25, %v2600_v32 }
 0x6d8   :  { %v1683_v46 = vpop.eup %1682 }
 0x6d9   :  { %v1353_v47 = vmul.f32 %v1683_v46, %v1348_v45 }
 0x6db   :  { %v1362_v48 = vsel %vm1357_vm7, %v1353_v47, %v2603_v39  ;;  %v1364_v49 = vsel %vm1357_vm7, %v1353_v47, 0.0 }
 0x6dc   :  { %1553 = vst [vmem:[%s2666_s5 + $0x30] sm:$0xff] %v1364_v49  ;;  %v1374_v51 = vpack.c.bf16 %v1362_v48, %v1362_v48 }
 0x6de   :  { %1408 = vmatmul.mubr.bf16.vlgmr.msra.gmra.mxu0 %v1374_v51  ;;  %1449 = vmatmul.mubr.bf16.vlgmr.msra.gmra.mxu1 %v1374_v51 }
 0x79e   :  { %v1409_v14 = vpop.f32.mrf.mxu0  ;;  %v1450_v15 = vpop.f32.mrf.mxu1 }
 0x79f   :  { %v1457_v62 = vadd.f32 %v1409_v14, %v2707_v6  ;;  %v1459_v61 = vadd.f32 %v1450_v15, %v2709_v60 }
 0x7a0   :  { %v1411_v8 = vpop.f32.mrf.mxu0  ;;  %v1452_v33 = vpop.f32.mrf.mxu1 }
 0x7a1   :  { %v1461_v56 = vmul.f32 0.5, %v1457_v62  ;;  %v1458_v9 = vadd.f32 %v1411_v8, %v2708_v58  ;;  %v1460_v35 = vadd.f32 %v1452_v33, %v2177_v55 }
 0x7a2   :  { %v1413_v10 = vpop.f32.mrf.mxu0  ;;  %v1454_v11 = vpop.f32.mrf.mxu1 }
 0x7a3   :  { %1684 = vtanh.f32 %v1461_v56  ;;  %v1465_v31 = vmul.f32 0.5, %v1458_v9  ;;  %v1470_v36 = vmul.f32 0.5, %v1460_v35 }
 0x7a4   :  { %v1414_v32 = vpop.f32.mrf.mxu0  ;;  %v1455_v34 = vpop.f32.mrf.mxu1 }
 0x7a5   :  { %1686 = vtanh.f32 %v1465_v31 }
 0x7a6   :  { %1688 = vtanh.f32 %v1459_v61 }
 0x7a7   :  { %1690 = vtanh.f32 %v1470_v36 }
 0x7b0   :  { %v1685_v37 = vpop.eup %1684 }
 0x7b1   :  { %v1463_v38 = vmul.f32 0.5, %v1685_v37 }
 0x7b2   :  { %v1687_v39 = vpop.eup %1686 }
 0x7b3   :  { %v1464_v42 = vadd.f32 0.5, %v1463_v38  ;;  %v1467_v43 = vmul.f32 0.5, %v1687_v39  ;;  %v1689_v50 = vpop.eup %1688 }
 0x7b4   :  { %v1691_v55 = vpop.eup %1690 }
 0x7b5   :  { %v1468_v0 = vadd.f32 0.5, %v1467_v43  ;;  %v1475_v7 = vmul.f32 %v1689_v50, %v1464_v42  ;;  %v1472_v5 = vmul.f32 0.5, %v1691_v55 }
 0x7b7   :  { %v1474_v52 = vmul.f32 %v1468_v0, %v1360_v26  ;;  %v1473_v41 = vadd.f32 0.5, %v1472_v5 }
 0x7b9   :  { %v1476_v3 = vadd.f32 %v1475_v7, %v1474_v52 }
 0x7bb   :  { %1692 = vtanh.f32 %v1476_v3  ;;  %v1485_v40 = vsel %vm1482_vm8, %v1476_v3, %v1360_v26 }
 0x7bc   :  { %1486 = vst [vmem:[#allocation4] sm:$0xff] %v1485_v40 }
 0x7c8   :  { %v1693_v18 = vpop.eup %1692 }
 0x7c9   :  { %v1478_v59 = vmul.f32 %v1693_v18, %v1473_v41 }
 0x7cb   :  { %v1487_v2 = vsel %vm1482_vm8, %v1478_v59, %v1362_v48  ;;  %v1489_v53 = vsel %vm1482_vm8, %v1478_v59, 0.0 }
 0x7cc   :  { %1488 = vst [vmem:[#allocation3] sm:$0xff] %v1487_v2  ;;  %1555 = vst [vmem:[%s2666_s5 + $0x38] sm:$0xff] %v1489_v53 }
 0x7cd PF:  {}

</bundles_post_ra>
